<compile_context>
chip_gen: v5e
topology: v5e:2x2
jax: 0.10.0
libtpu: 0.0.40
codegen_flags: <defaults>
</compile_context>

<pallas_src>
import jax
import jax.numpy as jnp
import numpy as np
from jax.experimental import pallas as pl
from jax.experimental.pallas import tpu as pltpu

# ---- model hyper-params (module defaults) ----------------------------------
DIM = 64          # dim
HID = 32          # hidden_dim
HIST = 32         # history_dim (== hidden_dim by default)
NH = 4            # num_heads
DEPTH = 3
VOCAB = 50
M_VAL = 1.0       # fix_max_value
LN_EPS = 1e-5

NHID = NH * HID    # 128
NHIST = NH * HIST  # 128


# ---------------------------------------------------------------------------
# Fused Pallas kernel: DEPTH Lima layers + predictor
# ---------------------------------------------------------------------------
def rotator_kernel(theta_ref, hist_ref,
                   w_x_ref, w_h_ref, b_in_ref,
                   b_a_ref, scale_ref, theta_bd_ref,
                   ln_w_ref, ln_b_ref,
                   w_out_ref, b_out_ref,
                   avg_ref, base_ref,
                   nh_ref, real_ref, imag_ref,
                   accum_ref):
    """Grid axis 0 = layer index l (sequential / "arbitrary").

    Per-step views:
      theta_ref    [B, DIM]          (same block every step)
      hist_ref     [B, NH*HIST]      (layer l history, lane-dense)
      w_x_ref      [DIM, NH*HID]     summed x-rows of fc_in
      w_h_ref      [NH*HIST, NH*HID] stacked hist-rows of fc_in
      b_in_ref     [1, NH*HID]
      b_a_ref      [1, NH*HID]       precomputed (sigmoid(shape)-0.5)/2
      scale_ref    [1, NH*HID]       precomputed M/(2*(e^prop+1))
      theta_bd_ref [NH*HID, NH*HIST] block-diagonal Theta
      ln_w_ref     [1, NH*HIST]      LN gamma tiled over heads
      ln_b_ref     [1, NH*HIST]      LN beta  tiled over heads
      w_out_ref    [NH*HIST, DIM]    fc_out with head-sum folded in
      b_out_ref    [1, DIM]
      avg_ref      [NH*HIST, NH*HIST] blockdiag(ones/HIST) for per-head mean
      base_ref     [1, DIM]
    Outputs:
      nh_ref       [B, NH*HIST]      LayerNorm(raw), layer l
      real_ref     [B, DIM]          written only on last step
      imag_ref     [B, DIM]          written only on last step
    Scratch:
      accum_ref    [B, DIM]          running sum of head-summed fc_out
    """
    l = pl.program_id(0)

    @pl.when(l == 0)
    def _():
        accum_ref[...] = jnp.zeros_like(accum_ref)

    x = theta_ref[...] - accum_ref[...]                              # [B, DIM]

    # fc_in, collapsed to two K-dense matmuls (x is identical per head).
    h = (b_in_ref[...]
         + jnp.dot(x, w_x_ref[...], preferred_element_type=jnp.float32)
         + jnp.dot(hist_ref[...], w_h_ref[...],
                   preferred_element_type=jnp.float32))              # [B, 128]

    # LIMA nonlinearity; cos(2h) = 2*cos(h)^2 - 1 (one transcendental).
    c = jnp.cos(h)
    o = M_VAL + scale_ref[...] * (-1.0 - b_a_ref[...] + c
                                  + b_a_ref[...] * (2.0 * c * c - 1.0))

    # einsum('bhm,hmn->bhn') as one block-diagonal matmul.
    raw = jnp.dot(o, theta_bd_ref[...],
                  preferred_element_type=jnp.float32)                # [B, 128]

    # Per-head LayerNorm, lane-dense via block-averaging matmul.
    mean = jnp.dot(raw, avg_ref[...], preferred_element_type=jnp.float32)
    xc = raw - mean
    var = jnp.dot(xc * xc, avg_ref[...], preferred_element_type=jnp.float32)
    nh_ref[...] = xc * jax.lax.rsqrt(var + LN_EPS) * ln_w_ref[...] + ln_b_ref[...]

    # fc_out with the per-head output sum folded into the weight/bias.
    out_sum = jnp.dot(raw, w_out_ref[...],
                      preferred_element_type=jnp.float32) + b_out_ref[...]
    accum_ref[...] = accum_ref[...] + out_sum                        # [B, DIM]

    # Predictor epilogue: base_vec * (cos(accum) + i*sin(accum)).
    @pl.when(l == pl.num_programs(0) - 1)
    def _():
        a = accum_ref[...]
        b = base_ref[...]
        real_ref[...] = b * jnp.cos(a)
        imag_ref[...] = b * jnp.sin(a)


# ---------------------------------------------------------------------------
# Wrapper
# ---------------------------------------------------------------------------
@jax.jit
def rotator_forward(kparams, data, hist_stacked):
    """data: [B] int32; hist_stacked: [DEPTH, B, NH*HIST] f32."""
    B = data.shape[0]
    theta = jnp.take(kparams["angle_embedding"], data, axis=0)       # [B, DIM]

    per_layer = lambda shape: pl.BlockSpec((None,) + shape, lambda l: (l, 0, 0))
    shared = lambda shape: pl.BlockSpec(shape, lambda l: (0, 0))

    grid_spec = pltpu.PrefetchScalarGridSpec(
        num_scalar_prefetch=0,
        grid=(DEPTH,),
        in_specs=[
            shared((B, DIM)),                 # theta
            per_layer((B, NHIST)),            # hist
            per_layer((DIM, NHID)),           # w_x
            per_layer((NHIST, NHID)),         # w_h
            per_layer((1, NHID)),             # b_in
            per_layer((1, NHID)),             # b_a
            per_layer((1, NHID)),             # scale
            per_layer((NHID, NHIST)),         # theta_bd
            per_layer((1, NHIST)),            # ln_w
            per_layer((1, NHIST)),            # ln_b
            per_layer((NHIST, DIM)),          # w_out (head-folded)
            per_layer((1, DIM)),              # b_out (head-folded)
            shared((NHIST, NHIST)),           # avg (LN block-mean matrix)
            shared((1, DIM)),                 # base_vec
        ],
        out_specs=(
            per_layer((B, NHIST)),            # next histories (lane-dense)
            shared((B, DIM)),                 # real
            shared((B, DIM)),                 # imag
        ),
        scratch_shapes=[pltpu.VMEM((B, DIM), jnp.float32)],          # accum
    )

    nh_stacked, real, imag = pl.pallas_call(
        rotator_kernel,
        out_shape=(
            jax.ShapeDtypeStruct((DEPTH, B, NHIST), jnp.float32),
            jax.ShapeDtypeStruct((B, DIM), jnp.float32),
            jax.ShapeDtypeStruct((B, DIM), jnp.float32),
        ),
        grid_spec=grid_spec,
        compiler_params=pltpu.CompilerParams(
            dimension_semantics=("arbitrary",)),
    )(theta, hist_stacked,
      kparams["w_x"], kparams["w_h"], kparams["b_in"],
      kparams["b_a"], kparams["scale"], kparams["theta_bd"],
      kparams["ln_w"], kparams["ln_b"],
      kparams["w_out"], kparams["b_out"],
      kparams["avg"], kparams["base_vec"])

    predicts = jax.lax.complex(real, imag)
    new_histories = [nh_stacked[l].reshape(B, NH, HIST) for l in range(DEPTH)]
    return predicts, {"histories": new_histories}


# ---------------------------------------------------------------------------
# One-time parameter packing (weight folding / stacking for the fused kernel)
# ---------------------------------------------------------------------------
def pack_params(params):
    w_x, w_h, b_in, b_a, scale = [], [], [], [], []
    theta_bd, ln_w, ln_b, w_out, b_out = [], [], [], [], []
    for lp in params["limas"]:
        wi3 = lp["w_in"].reshape(NH, DIM + HIST, NHID)
        w_x.append(wi3[:, :DIM, :].sum(axis=0))                       # [DIM, NHID]
        w_h.append(wi3[:, DIM:, :].reshape(NHIST, NHID))              # [NHIST, NHID]
        b_in.append(lp["b_in"])
        b_a.append(((jax.nn.sigmoid(lp["lima_shape"]) - 0.5) / 2).reshape(1, -1))
        scale.append((M_VAL / (2.0 * (jnp.exp(lp["proportion"]) + 1.0))).reshape(1, -1))
        theta_bd.append(jax.scipy.linalg.block_diag(
            *[lp["Theta"][h] for h in range(NH)]))                    # [NHID, NHIST]
        ln_w.append(jnp.tile(lp["ln_w"], (1, NH)))                    # [1, NHIST]
        ln_b.append(jnp.tile(lp["ln_b"], (1, NH)))
        w_out.append(lp["w_out"].reshape(NHIST, NH, DIM).sum(axis=1))  # [NHIST, DIM]
        b_out.append(lp["b_out"].reshape(NH, DIM).sum(axis=0, keepdims=True))
    avg = jnp.kron(jnp.eye(NH, dtype=jnp.float32),
                   jnp.full((HIST, HIST), 1.0 / HIST, jnp.float32))   # [NHIST, NHIST]
    return {
        "angle_embedding": params["angle_embedding"],
        "base_vec": params["base_vec"],
        "w_x": jnp.stack(w_x), "w_h": jnp.stack(w_h), "b_in": jnp.stack(b_in),
        "b_a": jnp.stack(b_a), "scale": jnp.stack(scale),
        "theta_bd": jnp.stack(theta_bd),
        "ln_w": jnp.stack(ln_w), "ln_b": jnp.stack(ln_b),
        "w_out": jnp.stack(w_out), "b_out": jnp.stack(b_out),
        "avg": avg,
    }


# ---------------------------------------------------------------------------
# Pure-JAX reference (mirrors the PyTorch code op-for-op) for verification
# ---------------------------------------------------------------------------
def lima_layer_ref(theta_x, hist, p):
    B = theta_x.shape[0]
    total_in = jnp.concatenate(
        [jnp.broadcast_to(theta_x[:, None, :], (B, NH, DIM)), hist],
        axis=-1).reshape(B, -1)
    h = (total_in @ p["w_in"] + p["b_in"]).reshape(B, NH, HID)
    b_a = (jax.nn.sigmoid(p["lima_shape"]) - 0.5) / 2
    scale = M_VAL / (2 * (jnp.exp(p["proportion"]) + 1))
    o = M_VAL + scale * (-1 - b_a + jnp.cos(h) + b_a * jnp.cos(2 * h))
    raw = jnp.einsum("bhm,hmn->bhn", o, p["Theta"])
    mean = raw.mean(-1, keepdims=True)
    var = ((raw - mean) ** 2).mean(-1, keepdims=True)
    nh = (raw - mean) / jnp.sqrt(var + LN_EPS) * p["ln_w"][0] + p["ln_b"][0]
    out = (raw.reshape(B, -1) @ p["w_out"] + p["b_out"]).reshape(B, NH, DIM)
    return out, nh


def rotator_ref(params, data, histories):
    theta = jnp.take(params["angle_embedding"], data, axis=0)
    accum = jnp.zeros_like(theta)
    new_histories = []
    for layer_num in range(DEPTH):
        out, nh = lima_layer_ref(theta - accum, histories[layer_num],
                                 params["limas"][layer_num])
        new_histories.append(nh)
        accum = accum + out.sum(axis=1)
    predicts = params["base_vec"] * jax.lax.complex(jnp.cos(accum),
                                                    jnp.sin(accum))
    return predicts, {"histories": new_histories}


# ---------------------------------------------------------------------------
# Deterministic parameter init (shapes from Rotator.__init__)
# ---------------------------------------------------------------------------
def init_params(key):
    keys = jax.random.split(key, 2 + DEPTH)
    params = {
        "angle_embedding": jax.random.normal(keys[0], (VOCAB, DIM), jnp.float32),
        "base_vec": jax.random.normal(keys[1], (1, DIM), jnp.float32),
        "limas": [],
    }
    in_f = NH * (DIM + HIST)
    for d in range(DEPTH):
        k = jax.random.split(keys[2 + d], 8)
        lp = {
            "proportion": jax.random.uniform(k[0], (NH, HID), jnp.float32),
            "lima_shape": jax.random.uniform(k[1], (NH, HID), jnp.float32),
            "w_in": (jax.random.normal(k[2], (in_f, NHID), jnp.float32)
                     / np.sqrt(in_f)),
            "b_in": jax.random.normal(k[3], (1, NHID), jnp.float32) * 0.01,
            "Theta": jax.random.uniform(k[4], (NH, HID, HIST), jnp.float32,
                                        minval=-np.pi, maxval=np.pi),
            "w_out": (jax.random.normal(k[5], (NHIST, NH * DIM), jnp.float32)
                      / np.sqrt(NHIST)),
            "b_out": jax.random.normal(k[6], (1, NH * DIM), jnp.float32) * 0.01,
            "ln_w": jnp.ones((1, HIST), jnp.float32),
            "ln_b": jnp.zeros((1, HIST), jnp.float32),
        }
        params["limas"].append(lp)
    return params


if __name__ == "__main__":
    B = 2
    root = jax.random.PRNGKey(0)
    k_param, k_data, k_hist = jax.random.split(root, 3)

    params = init_params(k_param)
    kparams = pack_params(params)

    data = jax.random.randint(k_data, (B,), 0, VOCAB, dtype=jnp.int32)
    hkeys = jax.random.split(k_hist, DEPTH)
    histories = [jax.random.normal(hkeys[i], (B, NH, HIST), jnp.float32)
                 for i in range(DEPTH)]
    hist_stacked = jnp.stack([h.reshape(B, NHIST) for h in histories], axis=0)

    predicts, state = rotator_forward(kparams, data, hist_stacked)
    predicts = jax.block_until_ready(predicts)
    state["histories"] = [jax.block_until_ready(h) for h in state["histories"]]

    # Verify against the pure-JAX reference of the PyTorch forward.
    ref_predicts, ref_state = rotator_ref(params, data, histories)
    np.testing.assert_allclose(np.asarray(predicts), np.asarray(ref_predicts),
                               rtol=2e-4, atol=2e-4)
    for a, b in zip(state["histories"], ref_state["histories"]):
        np.testing.assert_allclose(np.asarray(a), np.asarray(b),
                                   rtol=2e-4, atol=2e-4)

    print("KERNEL_OK")
</pallas_src>

<mosaic_0001>
module attributes {stable_mosaic.version = 11 : i64} {
  func.func @rotator_kernel(%arg0: i32, %arg1: memref<2x64xf32, #tpu.memory_space<vmem>>, %arg2: memref<1x2x128xf32, #tpu.memory_space<vmem>>, %arg3: memref<1x64x128xf32, #tpu.memory_space<vmem>>, %arg4: memref<1x128x128xf32, #tpu.memory_space<vmem>>, %arg5: memref<1x1x128xf32, #tpu.memory_space<vmem>>, %arg6: memref<1x1x128xf32, #tpu.memory_space<vmem>>, %arg7: memref<1x1x128xf32, #tpu.memory_space<vmem>>, %arg8: memref<1x128x128xf32, #tpu.memory_space<vmem>>, %arg9: memref<1x1x128xf32, #tpu.memory_space<vmem>>, %arg10: memref<1x1x128xf32, #tpu.memory_space<vmem>>, %arg11: memref<1x128x64xf32, #tpu.memory_space<vmem>>, %arg12: memref<1x1x64xf32, #tpu.memory_space<vmem>>, %arg13: memref<128x128xf32, #tpu.memory_space<vmem>>, %arg14: memref<1x64xf32, #tpu.memory_space<vmem>>, %arg15: memref<1x2x128xf32, #tpu.memory_space<vmem>>, %arg16: memref<2x64xf32, #tpu.memory_space<vmem>>, %arg17: memref<2x64xf32, #tpu.memory_space<vmem>>, %arg18: memref<2x64xf32, #tpu.memory_space<vmem>>) attributes {dimension_semantics = [#tpu.dimension_semantics<arbitrary>], iteration_bounds = array<i64: 3>, scalar_prefetch = 0 : i64, scratch_operands = 1 : i64, tpu.core_type = #tpu.core_type<tc>, window_params = [{pipeline_mode = #tpu.pipeline_mode<synchronous>, transform_indices = @transform_0, window_bounds = array<i64: 2, 64>}, {transform_indices = @transform_1, window_bounds = array<i64: 1, 2, 128>}, {transform_indices = @transform_2, window_bounds = array<i64: 1, 64, 128>}, {transform_indices = @transform_3, window_bounds = array<i64: 1, 128, 128>}, {transform_indices = @transform_4, window_bounds = array<i64: 1, 1, 128>}, {transform_indices = @transform_5, window_bounds = array<i64: 1, 1, 128>}, {transform_indices = @transform_6, window_bounds = array<i64: 1, 1, 128>}, {transform_indices = @transform_7, window_bounds = array<i64: 1, 128, 128>}, {transform_indices = @transform_8, window_bounds = array<i64: 1, 1, 128>}, {transform_indices = @transform_9, window_bounds = array<i64: 1, 1, 128>}, {transform_indices = @transform_10, window_bounds = array<i64: 1, 128, 64>}, {transform_indices = @transform_11, window_bounds = array<i64: 1, 1, 64>}, {pipeline_mode = #tpu.pipeline_mode<synchronous>, transform_indices = @transform_12, window_bounds = array<i64: 128, 128>}, {pipeline_mode = #tpu.pipeline_mode<synchronous>, transform_indices = @transform_13, window_bounds = array<i64: 1, 64>}, {transform_indices = @transform_14, window_bounds = array<i64: 1, 2, 128>}, {pipeline_mode = #tpu.pipeline_mode<synchronous>, transform_indices = @transform_15, window_bounds = array<i64: 2, 64>}, {pipeline_mode = #tpu.pipeline_mode<synchronous>, transform_indices = @transform_16, window_bounds = array<i64: 2, 64>}]} {
    %c0_i32 = arith.constant 0 : i32
    %0 = arith.cmpi eq, %arg0, %c0_i32 : i32
    %1 = arith.extui %0 : i1 to i32
    %c0_i32_0 = arith.constant 0 : i32
    %2 = arith.cmpi ne, %1, %c0_i32_0 : i32
    scf.if %2 {
      %cst_62 = arith.constant 0.000000e+00 : f32
      %79 = vector.broadcast %cst_62 : f32 to vector<2x64xf32>
      %c0_63 = arith.constant 0 : index
      %c0_64 = arith.constant 0 : index
      %80 = vector.load %arg18[%c0_63, %c0_64] : memref<2x64xf32, #tpu.memory_space<vmem>>, vector<2x64xf32>
      tpu.vector_store %arg18[%c0_63, %c0_64], %79 {strides = array<i32>} : memref<2x64xf32, #tpu.memory_space<vmem>>, vector<2x64xf32>,
    } else {
    }
    %c0 = arith.constant 0 : index
    %c0_1 = arith.constant 0 : index
    %3 = vector.load %arg1[%c0, %c0_1] : memref<2x64xf32, #tpu.memory_space<vmem>>, vector<2x64xf32>
    %c0_2 = arith.constant 0 : index
    %c0_3 = arith.constant 0 : index
    %4 = vector.load %arg18[%c0_2, %c0_3] : memref<2x64xf32, #tpu.memory_space<vmem>>, vector<2x64xf32>
    %5 = arith.subf %3, %4 : vector<2x64xf32>
    %c0_4 = arith.constant 0 : index
    %c0_5 = arith.constant 0 : index
    %c0_6 = arith.constant 0 : index
    %6 = vector.load %arg5[%c0_4, %c0_5, %c0_6] : memref<1x1x128xf32, #tpu.memory_space<vmem>>, vector<1x1x128xf32>
    %7 = vector.shape_cast %6 : vector<1x1x128xf32> to vector<1x128xf32>
    %c0_7 = arith.constant 0 : index
    %c0_8 = arith.constant 0 : index
    %c0_9 = arith.constant 0 : index
    %8 = vector.load %arg3[%c0_7, %c0_8, %c0_9] : memref<1x64x128xf32, #tpu.memory_space<vmem>>, vector<1x64x128xf32>
    %9 = vector.shape_cast %8 : vector<1x64x128xf32> to vector<64x128xf32>
    %cst = arith.constant dense<0.000000e+00> : vector<2x128xf32>
    %10 = tpu.matmul %5, %9, %cst {dimension_numbers = #tpu.dot_dimension_numbers<[1], [0], [0], [1], [0, 0, 1, 1], [], []>} : vector<2x64xf32>, vector<64x128xf32>, vector<2x128xf32> -> vector<2x128xf32>
    %11 = vector.broadcast %7 : vector<1x128xf32> to vector<2x128xf32>
    %12 = arith.addf %11, %10 : vector<2x128xf32>
    %c0_10 = arith.constant 0 : index
    %c0_11 = arith.constant 0 : index
    %c0_12 = arith.constant 0 : index
    %13 = vector.load %arg2[%c0_10, %c0_11, %c0_12] : memref<1x2x128xf32, #tpu.memory_space<vmem>>, vector<1x2x128xf32>
    %14 = vector.shape_cast %13 : vector<1x2x128xf32> to vector<2x128xf32>
    %c0_13 = arith.constant 0 : index
    %c0_14 = arith.constant 0 : index
    %c0_15 = arith.constant 0 : index
    %15 = vector.load %arg4[%c0_13, %c0_14, %c0_15] : memref<1x128x128xf32, #tpu.memory_space<vmem>>, vector<1x128x128xf32>
    %16 = vector.shape_cast %15 : vector<1x128x128xf32> to vector<128x128xf32>
    %cst_16 = arith.constant dense<0.000000e+00> : vector<2x128xf32>
    %17 = tpu.matmul %14, %16, %cst_16 {dimension_numbers = #tpu.dot_dimension_numbers<[1], [0], [0], [1], [0, 0, 1, 1], [], []>} : vector<2x128xf32>, vector<128x128xf32>, vector<2x128xf32> -> vector<2x128xf32>
    %18 = arith.addf %12, %17 : vector<2x128xf32>
    %19 = math.cos %18 : vector<2x128xf32>
    %c0_17 = arith.constant 0 : index
    %c0_18 = arith.constant 0 : index
    %c0_19 = arith.constant 0 : index
    %20 = vector.load %arg7[%c0_17, %c0_18, %c0_19] : memref<1x1x128xf32, #tpu.memory_space<vmem>>, vector<1x1x128xf32>
    %21 = vector.shape_cast %20 : vector<1x1x128xf32> to vector<1x128xf32>
    %c0_20 = arith.constant 0 : index
    %c0_21 = arith.constant 0 : index
    %c0_22 = arith.constant 0 : index
    %22 = vector.load %arg6[%c0_20, %c0_21, %c0_22] : memref<1x1x128xf32, #tpu.memory_space<vmem>>, vector<1x1x128xf32>
    %23 = vector.shape_cast %22 : vector<1x1x128xf32> to vector<1x128xf32>
    %cst_23 = arith.constant -1.000000e+00 : f32
    %24 = vector.broadcast %cst_23 : f32 to vector<1x128xf32>
    %25 = arith.subf %24, %23 : vector<1x128xf32>
    %26 = vector.broadcast %25 : vector<1x128xf32> to vector<2x128xf32>
    %27 = arith.addf %26, %19 : vector<2x128xf32>
    %c0_24 = arith.constant 0 : index
    %c0_25 = arith.constant 0 : index
    %c0_26 = arith.constant 0 : index
    %28 = vector.load %arg6[%c0_24, %c0_25, %c0_26] : memref<1x1x128xf32, #tpu.memory_space<vmem>>, vector<1x1x128xf32>
    %29 = vector.shape_cast %28 : vector<1x1x128xf32> to vector<1x128xf32>
    %cst_27 = arith.constant 2.000000e+00 : f32
    %30 = vector.broadcast %cst_27 : f32 to vector<2x128xf32>
    %31 = arith.mulf %30, %19 : vector<2x128xf32>
    %32 = arith.mulf %31, %19 : vector<2x128xf32>
    %cst_28 = arith.constant 1.000000e+00 : f32
    %33 = vector.broadcast %cst_28 : f32 to vector<2x128xf32>
    %34 = arith.subf %32, %33 : vector<2x128xf32>
    %35 = vector.broadcast %29 : vector<1x128xf32> to vector<2x128xf32>
    %36 = arith.mulf %35, %34 : vector<2x128xf32>
    %37 = arith.addf %27, %36 : vector<2x128xf32>
    %38 = vector.broadcast %21 : vector<1x128xf32> to vector<2x128xf32>
    %39 = arith.mulf %38, %37 : vector<2x128xf32>
    %cst_29 = arith.constant 1.000000e+00 : f32
    %40 = vector.broadcast %cst_29 : f32 to vector<2x128xf32>
    %41 = arith.addf %40, %39 : vector<2x128xf32>
    %c0_30 = arith.constant 0 : index
    %c0_31 = arith.constant 0 : index
    %c0_32 = arith.constant 0 : index
    %42 = vector.load %arg8[%c0_30, %c0_31, %c0_32] : memref<1x128x128xf32, #tpu.memory_space<vmem>>, vector<1x128x128xf32>
    %43 = vector.shape_cast %42 : vector<1x128x128xf32> to vector<128x128xf32>
    %cst_33 = arith.constant dense<0.000000e+00> : vector<2x128xf32>
    %44 = tpu.matmul %41, %43, %cst_33 {dimension_numbers = #tpu.dot_dimension_numbers<[1], [0], [0], [1], [0, 0, 1, 1], [], []>} : vector<2x128xf32>, vector<128x128xf32>, vector<2x128xf32> -> vector<2x128xf32>
    %c0_34 = arith.constant 0 : index
    %c0_35 = arith.constant 0 : index
    %45 = vector.load %arg13[%c0_34, %c0_35] : memref<128x128xf32, #tpu.memory_space<vmem>>, vector<128x128xf32>
    %cst_36 = arith.constant dense<0.000000e+00> : vector<2x128xf32>
    %46 = tpu.matmul %44, %45, %cst_36 {dimension_numbers = #tpu.dot_dimension_numbers<[1], [0], [0], [1], [0, 0, 1, 1], [], []>} : vector<2x128xf32>, vector<128x128xf32>, vector<2x128xf32> -> vector<2x128xf32>
    %47 = arith.subf %44, %46 : vector<2x128xf32>
    %48 = arith.mulf %47, %47 : vector<2x128xf32>
    %c0_37 = arith.constant 0 : index
    %c0_38 = arith.constant 0 : index
    %49 = vector.load %arg13[%c0_37, %c0_38] : memref<128x128xf32, #tpu.memory_space<vmem>>, vector<128x128xf32>
    %cst_39 = arith.constant dense<0.000000e+00> : vector<2x128xf32>
    %50 = tpu.matmul %48, %49, %cst_39 {dimension_numbers = #tpu.dot_dimension_numbers<[1], [0], [0], [1], [0, 0, 1, 1], [], []>} : vector<2x128xf32>, vector<128x128xf32>, vector<2x128xf32> -> vector<2x128xf32>
    %cst_40 = arith.constant 9.99999974E-6 : f32
    %51 = vector.broadcast %cst_40 : f32 to vector<2x128xf32>
    %52 = arith.addf %50, %51 : vector<2x128xf32>
    %53 = math.rsqrt %52 : vector<2x128xf32>
    %54 = arith.mulf %47, %53 : vector<2x128xf32>
    %c0_41 = arith.constant 0 : index
    %c0_42 = arith.constant 0 : index
    %c0_43 = arith.constant 0 : index
    %55 = vector.load %arg9[%c0_41, %c0_42, %c0_43] : memref<1x1x128xf32, #tpu.memory_space<vmem>>, vector<1x1x128xf32>
    %56 = vector.shape_cast %55 : vector<1x1x128xf32> to vector<1x128xf32>
    %57 = vector.broadcast %56 : vector<1x128xf32> to vector<2x128xf32>
    %58 = arith.mulf %54, %57 : vector<2x128xf32>
    %c0_44 = arith.constant 0 : index
    %c0_45 = arith.constant 0 : index
    %c0_46 = arith.constant 0 : index
    %59 = vector.load %arg10[%c0_44, %c0_45, %c0_46] : memref<1x1x128xf32, #tpu.memory_space<vmem>>, vector<1x1x128xf32>
    %60 = vector.shape_cast %59 : vector<1x1x128xf32> to vector<1x128xf32>
    %61 = vector.broadcast %60 : vector<1x128xf32> to vector<2x128xf32>
    %62 = arith.addf %58, %61 : vector<2x128xf32>
    %c0_47 = arith.constant 0 : index
    %c0_48 = arith.constant 0 : index
    %c0_49 = arith.constant 0 : index
    %63 = vector.load %arg15[%c0_47, %c0_48, %c0_49] : memref<1x2x128xf32, #tpu.memory_space<vmem>>, vector<1x2x128xf32>
    %64 = vector.shape_cast %63 : vector<1x2x128xf32> to vector<2x128xf32>
    %65 = vector.shape_cast %62 : vector<2x128xf32> to vector<1x2x128xf32>
    tpu.vector_store %arg15[%c0_47, %c0_48, %c0_49], %65 {strides = array<i32>} : memref<1x2x128xf32, #tpu.memory_space<vmem>>, vector<1x2x128xf32>,
    %c0_50 = arith.constant 0 : index
    %c0_51 = arith.constant 0 : index
    %c0_52 = arith.constant 0 : index
    %66 = vector.load %arg11[%c0_50, %c0_51, %c0_52] : memref<1x128x64xf32, #tpu.memory_space<vmem>>, vector<1x128x64xf32>
    %67 = vector.shape_cast %66 : vector<1x128x64xf32> to vector<128x64xf32>
    %cst_53 = arith.constant dense<0.000000e+00> : vector<2x64xf32>
    %68 = tpu.matmul %44, %67, %cst_53 {dimension_numbers = #tpu.dot_dimension_numbers<[1], [0], [0], [1], [0, 0, 1, 1], [], []>} : vector<2x128xf32>, vector<128x64xf32>, vector<2x64xf32> -> vector<2x64xf32>
    %c0_54 = arith.constant 0 : index
    %c0_55 = arith.constant 0 : index
    %c0_56 = arith.constant 0 : index
    %69 = vector.load %arg12[%c0_54, %c0_55, %c0_56] : memref<1x1x64xf32, #tpu.memory_space<vmem>>, vector<1x1x64xf32>
    %70 = vector.shape_cast %69 : vector<1x1x64xf32> to vector<1x64xf32>
    %71 = vector.broadcast %70 : vector<1x64xf32> to vector<2x64xf32>
    %72 = arith.addf %68, %71 : vector<2x64xf32>
    %c0_57 = arith.constant 0 : index
    %c0_58 = arith.constant 0 : index
    %73 = vector.load %arg18[%c0_57, %c0_58] : memref<2x64xf32, #tpu.memory_space<vmem>>, vector<2x64xf32>
    %74 = arith.addf %73, %72 : vector<2x64xf32>
    %c0_59 = arith.constant 0 : index
    %c0_60 = arith.constant 0 : index
    %75 = vector.load %arg18[%c0_59, %c0_60] : memref<2x64xf32, #tpu.memory_space<vmem>>, vector<2x64xf32>
    tpu.vector_store %arg18[%c0_59, %c0_60], %74 {strides = array<i32>} : memref<2x64xf32, #tpu.memory_space<vmem>>, vector<2x64xf32>,
    %c2_i32 = arith.constant 2 : i32
    %76 = arith.cmpi eq, %arg0, %c2_i32 : i32
    %77 = arith.extui %76 : i1 to i32
    %c0_i32_61 = arith.constant 0 : i32
    %78 = arith.cmpi ne, %77, %c0_i32_61 : i32
    scf.if %78 {
      %c0_62 = arith.constant 0 : index
      %c0_63 = arith.constant 0 : index
      %79 = vector.load %arg18[%c0_62, %c0_63] : memref<2x64xf32, #tpu.memory_space<vmem>>, vector<2x64xf32>
      %c0_64 = arith.constant 0 : index
      %c0_65 = arith.constant 0 : index
      %80 = vector.load %arg14[%c0_64, %c0_65] : memref<1x64xf32, #tpu.memory_space<vmem>>, vector<1x64xf32>
      %81 = math.cos %79 : vector<2x64xf32>
      %82 = vector.broadcast %80 : vector<1x64xf32> to vector<2x64xf32>
      %83 = arith.mulf %82, %81 : vector<2x64xf32>
      %c0_66 = arith.constant 0 : index
      %c0_67 = arith.constant 0 : index
      %84 = vector.load %arg16[%c0_66, %c0_67] : memref<2x64xf32, #tpu.memory_space<vmem>>, vector<2x64xf32>
      tpu.vector_store %arg16[%c0_66, %c0_67], %83 {strides = array<i32>} : memref<2x64xf32, #tpu.memory_space<vmem>>, vector<2x64xf32>,
      %85 = math.sin %79 : vector<2x64xf32>
      %86 = vector.broadcast %80 : vector<1x64xf32> to vector<2x64xf32>
      %87 = arith.mulf %86, %85 : vector<2x64xf32>
      %c0_68 = arith.constant 0 : index
      %c0_69 = arith.constant 0 : index
      %88 = vector.load %arg17[%c0_68, %c0_69] : memref<2x64xf32, #tpu.memory_space<vmem>>, vector<2x64xf32>
      tpu.vector_store %arg17[%c0_68, %c0_69], %87 {strides = array<i32>} : memref<2x64xf32, #tpu.memory_space<vmem>>, vector<2x64xf32>,
    } else {
    }
    return
  }
  func.func @transform_0(%arg0: i32) -> (i32, i32) {
    %c0_i32 = arith.constant 0 : i32
    %c0_i32_0 = arith.constant 0 : i32
    %c0_i32_1 = arith.constant 0 : i32
    return %c0_i32, %c0_i32_0 : i32, i32
  }
  func.func @transform_1(%arg0: i32) -> (i32, i32, i32) {
    %c0_i32 = arith.constant 0 : i32
    %c0_i32_0 = arith.constant 0 : i32
    %c0_i32_1 = arith.constant 0 : i32
    return %arg0, %c0_i32, %c0_i32_0 : i32, i32, i32
  }
  func.func @transform_2(%arg0: i32) -> (i32, i32, i32) {
    %c0_i32 = arith.constant 0 : i32
    %c0_i32_0 = arith.constant 0 : i32
    %c0_i32_1 = arith.constant 0 : i32
    return %arg0, %c0_i32, %c0_i32_0 : i32, i32, i32
  }
  func.func @transform_3(%arg0: i32) -> (i32, i32, i32) {
    %c0_i32 = arith.constant 0 : i32
    %c0_i32_0 = arith.constant 0 : i32
    %c0_i32_1 = arith.constant 0 : i32
    return %arg0, %c0_i32, %c0_i32_0 : i32, i32, i32
  }
  func.func @transform_4(%arg0: i32) -> (i32, i32, i32) {
    %c0_i32 = arith.constant 0 : i32
    %c0_i32_0 = arith.constant 0 : i32
    %c0_i32_1 = arith.constant 0 : i32
    return %arg0, %c0_i32, %c0_i32_0 : i32, i32, i32
  }
  func.func @transform_5(%arg0: i32) -> (i32, i32, i32) {
    %c0_i32 = arith.constant 0 : i32
    %c0_i32_0 = arith.constant 0 : i32
    %c0_i32_1 = arith.constant 0 : i32
    return %arg0, %c0_i32, %c0_i32_0 : i32, i32, i32
  }
  func.func @transform_6(%arg0: i32) -> (i32, i32, i32) {
    %c0_i32 = arith.constant 0 : i32
    %c0_i32_0 = arith.constant 0 : i32
    %c0_i32_1 = arith.constant 0 : i32
    return %arg0, %c0_i32, %c0_i32_0 : i32, i32, i32
  }
  func.func @transform_7(%arg0: i32) -> (i32, i32, i32) {
    %c0_i32 = arith.constant 0 : i32
    %c0_i32_0 = arith.constant 0 : i32
    %c0_i32_1 = arith.constant 0 : i32
    return %arg0, %c0_i32, %c0_i32_0 : i32, i32, i32
  }
  func.func @transform_8(%arg0: i32) -> (i32, i32, i32) {
    %c0_i32 = arith.constant 0 : i32
    %c0_i32_0 = arith.constant 0 : i32
    %c0_i32_1 = arith.constant 0 : i32
    return %arg0, %c0_i32, %c0_i32_0 : i32, i32, i32
  }
  func.func @transform_9(%arg0: i32) -> (i32, i32, i32) {
    %c0_i32 = arith.constant 0 : i32
    %c0_i32_0 = arith.constant 0 : i32
    %c0_i32_1 = arith.constant 0 : i32
    return %arg0, %c0_i32, %c0_i32_0 : i32, i32, i32
  }
  func.func @transform_10(%arg0: i32) -> (i32, i32, i32) {
    %c0_i32 = arith.constant 0 : i32
    %c0_i32_0 = arith.constant 0 : i32
    %c0_i32_1 = arith.constant 0 : i32
    return %arg0, %c0_i32, %c0_i32_0 : i32, i32, i32
  }
  func.func @transform_11(%arg0: i32) -> (i32, i32, i32) {
    %c0_i32 = arith.constant 0 : i32
    %c0_i32_0 = arith.constant 0 : i32
    %c0_i32_1 = arith.constant 0 : i32
    return %arg0, %c0_i32, %c0_i32_0 : i32, i32, i32
  }
  func.func @transform_12(%arg0: i32) -> (i32, i32) {
    %c0_i32 = arith.constant 0 : i32
    %c0_i32_0 = arith.constant 0 : i32
    %c0_i32_1 = arith.constant 0 : i32
    return %c0_i32, %c0_i32_0 : i32, i32
  }
  func.func @transform_13(%arg0: i32) -> (i32, i32) {
    %c0_i32 = arith.constant 0 : i32
    %c0_i32_0 = arith.constant 0 : i32
    %c0_i32_1 = arith.constant 0 : i32
    return %c0_i32, %c0_i32_0 : i32, i32
  }
  func.func @transform_14(%arg0: i32) -> (i32, i32, i32) {
    %c0_i32 = arith.constant 0 : i32
    %c0_i32_0 = arith.constant 0 : i32
    %c0_i32_1 = arith.constant 0 : i32
    return %arg0, %c0_i32, %c0_i32_0 : i32, i32, i32
  }
  func.func @transform_15(%arg0: i32) -> (i32, i32) {
    %c0_i32 = arith.constant 0 : i32
    %c0_i32_0 = arith.constant 0 : i32
    %c0_i32_1 = arith.constant 0 : i32
    return %c0_i32, %c0_i32_0 : i32, i32
  }
  func.func @transform_16(%arg0: i32) -> (i32, i32) {
    %c0_i32 = arith.constant 0 : i32
    %c0_i32_0 = arith.constant 0 : i32
    %c0_i32_1 = arith.constant 0 : i32
    return %c0_i32, %c0_i32_0 : i32, i32
  }
}

</mosaic_0001>

<bundles_post_ra>
// kernel: custom-call
= control target key start
LH: loop header
LB: loop body
LE: loop exit
PB: predicated region body
PF: predicated region fallthrough
CT: control target
= control target key end

     0   :  { %s105_s0 = inlined_call_operand.vmem [shape: f32[2,64], index: 0, kind: input, shape index: {}]   ;;  %s106_s1 = inlined_call_operand.vmem [shape: f32[2,64], index: 1, kind: input, shape index: {}]   ;;  %s107_s2 = inlined_call_operand.hbm [shape: c64[2,64], index: 2, kind: output, shape index: {}]  }
   0x1   :  { %s3_s11 = scalar_lea.hbm %s107_s2, 2 }
   0x2   :  { %4 = vsyncpa [#allocation0], 0  ;;  %s6_s14 = sshll.u32 %s105_s0, 4  ;;  %s8_s17 = sshll.u32 %s107_s2, 4  ;;  %s7_s14 = int_to_ptr.vmem [resolvable:$true] %s6_s14  ;;  %s9_s17 = int_to_ptr.hbm [resolvable:$true] %s8_s17 }
   0x3   :  { %11 = dma.vmem_to_hbm [thread:$0]  %s7_s14, 32, %s9_s17, [#allocation0] }
   0x4   :  { %74 = dma.done.wait [#allocation0], 32  }
   0x5   :  { %75 = vsyncadd [#allocation0], 4294967264 }
   0x6   :  { %14 = vsyncpa [#allocation0], 1 }
   0x7   :  { %15 = vsyncpa [#allocation1], 0  ;;  %s17_s20 = sshll.u32 %s106_s1, 4  ;;  %s19_s21 = sshll.u32 %s3_s11, 4  ;;  %s18_s20 = int_to_ptr.vmem [resolvable:$true] %s17_s20  ;;  %s20_s21 = int_to_ptr.hbm [resolvable:$true] %s19_s21 }
   0x8   :  { %22 = dma.vmem_to_hbm [thread:$0]  %s18_s20, 32, %s20_s21, [#allocation1] }
   0x9   :  { %76 = dma.done.wait [#allocation1], 32  }
   0xa   :  { %77 = vsyncadd [#allocation1], 4294967264 }
   0xb   :  { %25 = vsyncpa [#allocation1], 1 }

// kernel: squeeze.5
= control target key start
LH: loop header
LB: loop body
LE: loop exit
PB: predicated region body
PF: predicated region fallthrough
CT: control target
= control target key end

     0   :  { %s102_s0 = inlined_call_operand.vmem [shape: f32[1,2,128], index: 0, kind: input, shape index: {}]   ;;  %s103_s1 = inlined_call_operand.hbm [shape: f32[2,4,32], index: 1, kind: output, shape index: {}]  }
   0x1   :  { %v5_v0 = vld [vmem:[%s102_s0] sm:$0x3] }
   0x2   :  { %6 = vst [vmem:[#allocation3] sm:$0x3] %v5_v0 }
   0x3   :  { %2 = vsyncpa [#allocation1], 0  ;;  %s82_s0 = smov 96   ;;  %s83_s8 = smov 32   ;;  %vm8_vm0 = vcmask 261120  }
   0x4   :  { %s84_s9 = smov 64   ;;  %s85_s10 = smov [#allocation0]  }
   0x5   :  { %s43_s11 = sshll.u32 %s85_s10, 4  ;;  %s45_s1 = sshll.u32 %s103_s1, 4  ;;  %s44_s11 = int_to_ptr.vmem [resolvable:$true] %s43_s11  ;;  %s46_s1 = int_to_ptr.hbm [resolvable:$true] %s45_s1 }
   0x9   :  { %v10_v1 = vld [vmem:[#allocation3] sm:$0x3]  }
   0xa   :  { %v22_v2 = vld [vmem:[#allocation3] sm:$0x3]   ;;  %11 = vrot.lane.b32.xlu0 %v10_v1, %s82_s0 }
   0xb   :  { %23 = vrot.lane.b32.xlu1 %v22_v2, %s83_s8  ;;  %v16_v3 = vld [vmem:[#allocation3] sm:$0x3]  }
   0xc   :  { %v7_v4 = vld [vmem:[#allocation3] sm:$0x3]  }
   0xd   :  { %9 = vst.msk [vmem:[#allocation2] ss:$8 sm:$0x3] %vm8_vm0, %v7_v4  }
  0x12   :  { %17 = vrot.lane.b32.xlu0 %v16_v3, %s84_s9 }
  0x7c   :  { %v12_v5 = vpop.permute.xlu0 %11  }
  0x7d   :  { %v24_v6 = vpop.permute.xlu1 %23   ;;  %15 = vst.msk [vmem:[#allocation2 + $0x1] ss:$8 sm:$0x3] %vm8_vm0, %v12_v5  }
  0x7e   :  { %27 = vst.msk [vmem:[#allocation2 + $0x3] ss:$8 sm:$0x3] %vm8_vm0, %v24_v6  }
  0x84   :  { %v18_v7 = vpop.permute.xlu0 %17  }
  0x85   :  { %21 = vst.msk [vmem:[#allocation2 + $0x2] ss:$8 sm:$0x3] %vm8_vm0, %v18_v7  }
  0x8c   :  { %v30_v8 = vld [vmem:[#allocation2] sm:$0xf]  ;;  %v35_v9 = vld [vmem:[#allocation2 + $0x8] sm:$0xf] }
  0x8d   :  { %33 = vst [vmem:[#allocation0] sm:$0xf] %v30_v8 }
  0x8e   :  { %39 = vst [vmem:[#allocation0 + $0x4] sm:$0xf] %v35_v9 }
  0x8f   :  { %48 = dma.vmem_to_hbm [thread:$0]  %s44_s11, 128, %s46_s1, [#allocation1]  }
  0x90   :  { %80 = dma.done.wait [#allocation1], 128  }
  0x91   :  { %81 = vsyncadd [#allocation1], 4294967168 }
  0x92   :  { %51 = vsyncpa [#allocation1], 1 }

// kernel: rotator_forward.1
= control target key start
LH: loop header
LB: loop body
LE: loop exit
PB: predicated region body
PF: predicated region fallthrough
CT: control target
= control target key end

     0   :  { %s2347_s0 = inlined_call_operand.vmem [shape: f32[2,64], index: 0, kind: input, shape index: {}]   ;;  %s2348_s1 = inlined_call_operand.vmem [shape: f32[3,2,128], index: 1, kind: input, shape index: {}]   ;;  %s2349_s2 = inlined_call_operand.vmem [shape: f32[3,64,128], index: 2, kind: input, shape index: {}]   ;;  %s2350_s3 = inlined_call_operand.vmem [shape: f32[3,128,128], index: 3, kind: input, shape index: {}]   ;;  %s2351_s4 = inlined_call_operand.vmem [shape: f32[3,1,128], index: 4, kind: input, shape index: {}]   ;;  %s2352_s5 = inlined_call_operand.vmem [shape: f32[3,1,128], index: 5, kind: input, shape index: {}]   ;;  %s2353_s6 = inlined_call_operand.vmem [shape: f32[3,1,128], index: 6, kind: input, shape index: {}]   ;;  %s2354_s7 = inlined_call_operand.hbm [shape: f32[3,128,128], index: 7, kind: input, shape index: {}]   ;;  %s2355_s8 = inlined_call_operand.vmem [shape: f32[3,1,128], index: 8, kind: input, shape index: {}]   ;;  %s2356_s9 = inlined_call_operand.vmem [shape: f32[3,1,128], index: 9, kind: input, shape index: {}]   ;;  %s2357_s10 = inlined_call_operand.vmem [shape: f32[3,128,64], index: 10, kind: input, shape index: {}]   ;;  %s2358_s11 = inlined_call_operand.vmem [shape: f32[3,1,64], index: 11, kind: input, shape index: {}]   ;;  %s2359_s12 = inlined_call_operand.hbm [shape: f32[128,128], index: 12, kind: input, shape index: {}]   ;;  %s2360_s13 = inlined_call_operand.vmem [shape: f32[1,64], index: 13, kind: input, shape index: {}]   ;;  %s2361_s14 = inlined_call_operand.vmem [shape: f32[3,2,128], index: 14, kind: output, shape index: {0}]   ;;  %s2362_s15 = inlined_call_operand.vmem [shape: f32[2,64], index: 15, kind: output, shape index: {1}]   ;;  %s2363_s16 = inlined_call_operand.vmem [shape: f32[2,64], index: 16, kind: output, shape index: {2}]  }
   0x1   :  { %2368 = sst [smem:[#allocation13_spill]] %s2347_s0 }
   0x2   :  { %2369 = sst [smem:[#allocation14_spill]] %s2348_s1 }
   0x3   :  { %2370 = sst [smem:[#allocation15_spill]] %s2349_s2 }
   0x4   :  { %2371 = sst [smem:[#allocation16_spill]] %s2350_s3 }
   0x5   :  { %2372 = sst [smem:[#allocation17_spill]] %s2352_s5 }
   0x6   :  { %2373 = sst [smem:[#allocation18_spill]] %s2354_s7 }
   0x7   :  { %2374 = sst [smem:[#allocation19_spill]] %s2356_s9 }
   0x8   :  { %2375 = sst [smem:[#allocation20_spill]] %s2357_s10 }
   0x9   :  { %2376 = sst [smem:[#allocation21_spill]] %s2358_s11 }
   0xa   :  { %2377 = sst [smem:[#allocation22_spill]] %s2359_s12 }
   0xb   :  { %2378 = sst [smem:[#allocation23_spill]] %s2360_s13 }
   0xc   :  { %2379 = sst [smem:[#allocation24_spill]] %s2361_s14 }
   0xd   :  { %2380 = sst [smem:[#allocation25_spill]] %s2362_s15 }
   0xe   :  { %2381 = sst [smem:[#allocation26_spill]] %s2363_s16 }
   0xf   :  { %22 = vsyncpa [#allocation4], 0 }
  0x10   :  { %24 = vsyncpa [#allocation4 + $0x1], 0 }
  0x11   :  { %25 = vsyncpa [#allocation6], 0  ;;  %s1960_s21 = smov 0   ;;  %s1962_s22 = smov 0  }
  0x12   :  { %s1964_s23 = smov 0   ;;  %s1966_s24 = smov 0  }
  0x13 LB: > { %2382 = sst [smem:[#allocation9_spill]] %s1847_s22  ;;  %s1979_s25 = sadd.s32 4294967295, %s1855_s24   ;;  %s1855_s24 = sphi %s1966_s24, %s2409_s24   ;;  %s1851_s23 = sphi %s1964_s23, %s2412_s23   ;;  %s1847_s22 = sphi %s1962_s22, %s2411_s22   ;;  %s1843_s21 = sphi %s1960_s21, %s2410_s21  }
  0x14   : > { %2383 = sst [smem:[#allocation10_spill]] %s1851_s23  ;;  %p228_p0 = scmp.ne.s32.totalorder %s1847_s22, %s1843_s21 }
  0x15   : > { %p229_p1 = scmp.eq.s32.totalorder %s1979_s25, 0  ;;  %p1645_p2 = scmp.ge.s32.totalorder %s1855_s24, 1 }
  0x16   : > { %p453_p3 = scmp.lt.s32.totalorder %s1855_s24, 4  ;;  %p1646_p4 = scmp.ne.s32.totalorder %s1979_s25, 0 }
  0x17   : > { %p1988_p5 = por %p229_p1, %p228_p0  ;;  %s2385_s12 = sld [smem:[#allocation22_spill]] }
  0x18   : > { %p1995_p6 = pnand %p1645_p2, %p453_p3  ;;  %s1857_s0 = smov [#allocation5]  }
  0x19   : > { %s469_s17 = sshll.u32 %s1857_s0, 4  ;;  %s2004_s18 = sadd.s32 1, %s1855_s24   ;;  %s470_s17 = int_to_ptr.vmem [resolvable:$true] %s469_s17 }
  0x1a   : > { %p1687_p7 = pneg %p1995_p6  ;;  %2387 = sst [smem:[#allocation11_spill]] %s2004_s18 }
  0x1b   : > { %s1858_s19 = smov 128   ;;  %s1859_s20 = smov 8  }
  0x1c   : > { %p1688_p8 = pnand %p1687_p7, %p229_p1  ;;  %s212_s21 = ssub.s32 %s1855_s24, %s2004_s18 }
  0x1d   : > { %s467_s29 = sshll.u32 %s2385_s12, 4  ;;  %s215_s27 = sadd.s32 1, %s1851_s23  ;;  %s468_s29 = int_to_ptr.hbm [resolvable:$true] %s467_s29 }
  0x1e   : > { %1690 = dma.hbm_to_vmem [thread:$0]  (!%p1688_p8), %s468_s29, 2048, %s470_s17, [#allocation6], %s1858_s19, %s1858_s19, %s1859_s20  }
  0x1f   : > { %p213_p9 = scmp.eq.s32.totalorder %s212_s21, 0  ;;  %p222_p10 = scmp.ne.s32.totalorder %s1851_s23, %s1847_s22 }
  0x20   : > { %p223_p11 = scmp.eq.s32.totalorder %s1855_s24, 0  ;;  %p1696_p12 = scmp.lt.s32.totalorder %s1855_s24, 3 }
  0x21   : > { %s2017_s28 = scalar_select %p213_p9, %s1851_s23, %s215_s27  }
  0x22   : > { %p224_p13 = por %p223_p11, %p222_p10  ;;  %s527_s0 = sand.u32 1, %s1851_s23  }
  0x23   : > { %2388 = sst [smem:[#allocation12_spill]] %s2017_s28  ;;  %s1648_s12 = sshll.u32 %s527_s0, 7 }
  0x24   : > { %s1677_s16 = sshll.u32 %s1855_s24, 7  ;;  %s2389_s7 = sld [smem:[#allocation18_spill]] }
  0x25   : > { %s531_s11 = scalar_lea.vmem [#allocation3], %s1648_s12  ;;  %p2024_p0 = pnand %p1696_p12, %p224_p13 }
  0x26   : > { %s539_s10 = sshll.u32 %s531_s11, 4  ;;  %s528_s17 = scalar_lea.sflag [#allocation4], %s527_s0  ;;  %s540_s10 = int_to_ptr.vmem [resolvable:$true] %s539_s10 }
  0x27   : > { %p1791_p3 = pneg %p2024_p0 }
  0x2a   : > { %s536_s14 = scalar_lea.hbm %s2389_s7, %s1677_s16  ;;  %s1794_s11 = scalar_lea.hbm %s2389_s7, 384 }
  0x2b   : > { %s537_s9 = sshll.u32 %s536_s14, 4  ;;  %s538_s9 = int_to_ptr.hbm [resolvable:$true] %s537_s9 }
  0x2c   : > { %s1787_s21 = sshra.s32 %s538_s9, 4  ;;  %s1788_s21 = int_to_ptr.hbm [resolvable:$true] %s1787_s21 }
  0x2d   : > { %s1789_s27 = scalar_lea.hbm %s1788_s21, 128  ;;  %p1795_p9 = scmp.lt.s32.totalorder %s1788_s21, %s2389_s7 }
  0x2e   : > { %p1790_p2 = scmp.ne.s32.totalorder %s1788_s21, %s1789_s27  ;;  %p1796_p10 = scmp.lt.s32.totalorder %s1794_s11, %s1789_s27 }
  0x30   : > { %p1792_p7 = pnand %p1791_p3, %p1790_p2  ;;  %p1797_p11 = por %p1796_p10, %p1795_p9 }
  0x32   : > { %p1793_p8 = pneg %p1792_p7 }
  0x34   : > { %p1798_p12 = pnand %p1797_p11, %p1793_p8 }
  0x36   : > { %1801 = shalt.err (!%p1798_p12)
}
  0x37   : > { %1694 = dma.hbm_to_vmem [thread:$0]  (!%p2024_p0), %s538_s9, 2048, %s540_s10, %s528_s17, %s1858_s19, %s1858_s19, %s1859_s20  }
  0x38   : > { %577 = sbr.rel (%p1995_p6) target bundleno = 876 (0x36c), region = 76  ;;  %s579_s16 = sand.u32 (!%p1995_p6), 1, %s1847_s22  }
  0x39   : > { %s1652_s24 = sshll.u32 (!%p1995_p6), %s579_s16, 7  ;;  %s580_s0 = scalar_lea.sflag (!%p1995_p6), [#allocation4], %s579_s16 }
  0x3a   : > { %s2044_s13 = scalar_lea.vmem (!%p1995_p6), [#allocation3], %s1652_s24 }
  0x3d   : > { %1834 = dma.done.wait (%p1988_p5), %s580_s0, 2048  }
  0x3e   : > { %1836 = vsyncadd (%p1988_p5), %s580_s0, 4294965248 }
  0x3f   : > { %1838 = dma.done.wait (%p229_p1), [#allocation6], 2048  }
  0x40   : > { %1840 = vsyncadd (%p229_p1), [#allocation6], 4294965248  ;;  %p674_p6 = scmp.lt.s32.totalorder %s1979_s25, 2  ;;  %s2391_s1 = sld [smem:[#allocation14_spill]] }
  0x41   : > { %s2392_s2 = sld [smem:[#allocation15_spill]] }
  0x42   : > { %s2056_s9 = scalar_select %p674_p6, %s1979_s25, 2 }
  0x43   : > { %s2393_s3 = sld [smem:[#allocation16_spill]] }
  0x44   : > { %s1654_s10 = sshll.u32 %s2056_s9, 1  ;;  %s1678_s26 = sshll.u32 %s2056_s9, 6 }
  0x45   : > { %s1679_s27 = sshll.u32 %s2056_s9, 7  ;;  %s2394_s5 = sld [smem:[#allocation17_spill]] }
  0x46   : > { %s2063_s20 = scalar_lea.vmem %s2391_s1, %s1654_s10  ;;  %s2395_s14 = sld [smem:[#allocation19_spill]] }
  0x47   : > { %s2068_s21 = scalar_lea.vmem %s2392_s2, %s1678_s26  ;;  %s699_s2 = scalar_lea.vmem %s2355_s8, %s2056_s9 }
  0x48   : > { %s2398_s19 = sld [smem:[#allocation24_spill]] }
  0x49   : > { %s2078_s24 = scalar_lea.vmem %s2393_s3, %s1679_s27  ;;  %s2396_s3 = sld [smem:[#allocation20_spill]] }
  0x4b   : > { %s2084_s30 = scalar_lea.vmem %s2394_s5, %s2056_s9  ;;  %s2397_s5 = sld [smem:[#allocation21_spill]] }
  0x4c   : > { %s702_s28 = scalar_lea.vmem %s2395_s14, %s2056_s9 }
  0x4d   : > { %718 = sbr.rel (%p1646_p4) target bundleno = 84 (0x54), region = 88 }
  0x4e   : > { %s2110_s26 = scalar_lea.vmem %s2398_s19, %s1654_s10 }
  0x4f   : > { %s2101_s23 = scalar_lea.vmem %s2396_s3, %s1679_s27 }
  0x51   : > { %s710_s22 = scalar_lea.vmem %s2397_s5, %s2056_s9 }
  0x52   : > { %vm719_vm0 = vcmask 517120   ;;  %v1860_v0 = vmov 0.0  }
  0x53   : > { %720 = vst.msk [vmem:[#allocation2] sm:$0x3] %vm719_vm0, %v1860_v0 }
  0x54 PF: > { %v777_v1 = vld [vmem:[%s2078_s24 + $0x78] sm:$0xff]  ;;  %v776_v2 = vld [vmem:[%s2078_s24 + $0x70] sm:$0xff]  ;;  %v775_v3 = vld [vmem:[%s2078_s24 + $0x68] sm:$0xff]  ;;  %s2399_s18 = sld [smem:[#allocation13_spill]]  ;;  %vm733_vm1 = vcmask 523264   ;;  %s2400_s27 = scalar_lea.vmem %s2351_s4, %s2056_s9 }
  0x55   : > { %778 = vmatpush.msra.mxu1 %v777_v1  ;;  %v732_v4 = vld [vmem:[%s2068_s21 + $0x38] sm:$0xff]  ;;  %v731_v5 = vld [vmem:[%s2068_s21 + $0x30] sm:$0xff]  ;;  %v774_v6 = vld [vmem:[%s2078_s24 + $0x60] sm:$0xff]  ;;  %v1861_v45 = vmov 683565275   ;;  %s2403_s14 = scalar_lea.vmem %s2353_s6, %s2056_s9  ;;  %p1668_p1 = scmp.ne.s32.totalorder %s1979_s25, 2 }
  0x56   : > { %745 = vmatpush.msra.mxu0 %v732_v4  ;;  %v730_v7 = vld [vmem:[%s2068_s21 + $0x28] sm:$0xff]  ;;  %v773_v8 = vld [vmem:[%s2078_s24 + $0x58] sm:$0xff]  ;;  %v729_v9 = vld [vmem:[%s2068_s21 + $0x20] sm:$0xff]  ;;  %v1862_v47 = vmov 2475754826   ;;  %s2407_s15 = sld [smem:[#allocation25_spill]] (!%p1668_p1) }
  0x57   : > { %779 = vmatpush.msra.mxu1 %v776_v2  ;;  %v772_v10 = vld [vmem:[%s2078_s24 + $0x50] sm:$0xff]  ;;  %v771_v11 = vld [vmem:[%s2078_s24 + $0x48] sm:$0xff]  ;;  %v728_v12 = vld [vmem:[%s2068_s21 + $0x18] sm:$0xff]  ;;  %v1863_v50 = vmov 2131351028   ;;  %s2408_s0 = sld [smem:[#allocation26_spill]] (!%p1668_p1) }
  0x58   : > { %746 = vmatpush.msra.mxu0 %v731_v5  ;;  %v727_v13 = vld [vmem:[%s2068_s21 + $0x10] sm:$0xff]  ;;  %v770_v16 = vld [vmem:[%s2078_s24 + $0x40] sm:$0xff]  ;;  %v726_v17 = vld [vmem:[%s2068_s21 + $0x8] sm:$0xff]  ;;  %v1864_v53 = vmov 2102212464  }
  0x59   : > { %780 = vmatpush.msra.mxu1 %v775_v3  ;;  %v769_v18 = vld [vmem:[%s2078_s24 + $0x38] sm:$0xff]  ;;  %v725_v19 = vld [vmem:[%s2068_s21] sm:$0xff]  ;;  %v768_v21 = vld [vmem:[%s2078_s24 + $0x30] sm:$0xff]  ;;  %v1865_v56 = vmov 920167782  }
  0x5a   : > { %747 = vmatpush.msra.mxu0 %v730_v7  ;;  %v721_v14 = vld [vmem:[%s2399_s18] sm:$0x3]  ;;  %v767_v22 = vld [vmem:[%s2078_s24 + $0x28] sm:$0xff]  ;;  %v765_v24 = vld [vmem:[%s2078_s24 + $0x18] sm:$0xff]  ;;  %v1866_v59 = vmov 1326507024  }
  0x5b   : > { %781 = vmatpush.msra.mxu1 %v774_v6  ;;  %v722_v15 = vld [vmem:[#allocation2] sm:$0x3]  ;;  %v764_v25 = vld [vmem:[%s2078_s24 + $0x10] sm:$0xff]  ;;  %v763_v26 = vld [vmem:[%s2078_s24 + $0x8] sm:$0xff] }
  0x5c   : > { %748 = vmatpush.msra.mxu0 %v729_v9  ;;  %v723_v20 = vsub.f32 %v721_v14, %v722_v15  ;;  %v766_v23 = vld [vmem:[%s2078_s24 + $0x20] sm:$0xff] }
  0x5d   : > { %782 = vmatpush.msra.mxu1 %v773_v8  ;;  %v762_v27 = vld [vmem:[%s2078_s24] sm:$0xff] }
  0x5e   : > { %749 = vmatpush.msra.mxu0 %v728_v12  ;;  %v761_v28 = vld [vmem:[%s2063_s20] sm:$0x3] }
  0x5f   : > { %783 = vmatpush.msra.mxu1 %v772_v10  ;;  %v1748_v29 = vld [vmem:[%s2400_s27] ss:$0 sm:$0xff] }
  0x60   : > { %750 = vmatpush.msra.mxu0 %v727_v13 }
  0x61   : > { %784 = vmatpush.msra.mxu1 %v771_v11 }
  0x62   : > { %751 = vmatpush.msra.mxu0 %v726_v17 }
  0x63   : > { %785 = vmatpush.msra.mxu1 %v770_v16 }
  0x64   : > { %752 = vmatpush.msra.mxu0 %v725_v19 }
  0x65   : > { %786 = vmatpush.msra.mxu1 %v769_v18  ;;  %1663 = vmatmul.msk.f32.vlgmr.msra.gmra.mxu0 %vm733_vm1, %v723_v20 }
  0x67   : > { %787 = vmatpush.msra.mxu1 %v768_v21 }
  0x69   : > { %788 = vmatpush.msra.mxu1 %v767_v22 }
  0x6b   : > { %789 = vmatpush.msra.mxu1 %v766_v23 }
  0x6d   : > { %790 = vmatpush.msra.mxu1 %v765_v24 }
  0x6f   : > { %791 = vmatpush.msra.mxu1 %v764_v25 }
  0x71   : > { %792 = vmatpush.msra.mxu1 %v763_v26 }
  0x73   : > { %793 = vmatpush.msra.mxu1 %v762_v27 }
  0x74   : > { %794 = vmatmul.f32.vlgmr.msra.gmra.mxu1 %v761_v28 }
  0xe2   : > { %v754_v30 = vpop.f32.mrf.mxu0 }
  0xe3   : > { %v760_v31 = vadd.f32 %v1748_v29, %v754_v30  ;;  %v1867_v29 = vmov 0  }
  0xf1   : > { %v795_v32 = vpop.f32.mrf.mxu1 }
  0xf2   : > { %v2147_v33 = vadd.f32 %v795_v32, %v760_v31 }
  0xf4   : > { %v802_v34 = vand.u32 2139095040, %v2147_v33  ;;  %v799_v37 = vand.u32 2147483647, %v2147_v33  ;;  %vm801_vm14 = vcmp.lt.s32.totalorder %v2147_v33, 0 }
  0xf6   : > { %v803_v35 = vshrl.u32 %v802_v34, 23  ;;  %v806_v39 = vand.u32 8388607, %v799_v37  ;;  %vm2218_vm15 = vcmp.le.f32.partialorder %v799_v37, 0.7853982 }
  0xf8   : > { %v1664_v36 = vadd.s32 4294967169, %v803_v35  ;;  %v807_v43 = vor.u32 8388608, %v806_v39 }
  0xfa   : > { %v809_v38 = vadd.s32 1, %v1664_v36  ;;  %v2164_v2 = vshll.u32 %v807_v43, 8 }
  0xfc   : > { %vm810_vm2 = vcmp.gt.s32.totalorder %v809_v38, 0  ;;  %v848_v11 = vand.u32 65535, %v2164_v2  ;;  %v849_v12 = vshrl.u32 %v2164_v2, 16 }
  0xfd   : > { %v811_v40 = vsel %vm810_vm2, %v809_v38, 0 }
  0xfe   : > { %v813_v41 = vand.u32 31, %v811_v40  ;;  %v2155_v44 = vshrl.u32 %v811_v40, 5 }
 0x100   : > { %v2153_v42 = vsub.s32 32, %v813_v41  ;;  %v816_v46 = vshll.u32 %v1861_v45, %v813_v41  ;;  %v819_v48 = vshll.u32 %v1862_v47, %v813_v41  ;;  %v822_v52 = vshll.u32 %v1863_v50, %v813_v41 }
 0x101   : > { %v825_v55 = vshll.u32 %v1864_v53, %v813_v41  ;;  %v828_v58 = vshll.u32 %v1865_v56, %v813_v41  ;;  %vm831_vm3 = vcmp.lt.s32.totalorder %v2155_v44, 1  ;;  %vm834_vm4 = vcmp.lt.s32.totalorder %v2155_v44, 4 }
 0x102   : > { %v817_v49 = vshrl.u32 %v1862_v47, %v2153_v42  ;;  %v820_v51 = vshrl.u32 %v1863_v50, %v2153_v42  ;;  %v823_v54 = vshrl.u32 %v1864_v53, %v2153_v42  ;;  %v826_v57 = vshrl.u32 %v1865_v56, %v2153_v42 }
 0x103   : > { %v829_v60 = vshrl.u32 %v1866_v59, %v2153_v42  ;;  %vm833_vm5 = vcmp.lt.s32.totalorder %v2155_v44, 3  ;;  %vm832_vm6 = vcmp.lt.s32.totalorder %v2155_v44, 2  ;;  %v815_v40 = vshrl.u32 %v1861_v45, %v2153_v42  ;;  %v987_v44 = vld [vmem:[%s2044_s13 + $0x70] sm:$0xff] }
 0x104   : > { %v818_v61 = vor.u32 %v817_v49, %v816_v46  ;;  %v821_v62 = vor.u32 %v820_v51, %v819_v48  ;;  %v824_v63 = vor.u32 %v823_v54, %v822_v52  ;;  %v827_v0 = vor.u32 %v826_v57, %v825_v55 }
 0x105   : > { %v830_v1 = vor.u32 %v829_v60, %v828_v58 }
 0x106   : > { %v839_v3 = vsel %vm831_vm3, %v818_v61, %v821_v62  ;;  %v843_v4 = vsel %vm831_vm3, %v821_v62, %v824_v63  ;;  %v840_v5 = vsel %vm834_vm4, %v827_v0, 920167782  ;;  %v836_v36 = vsel %vm834_vm4, %v824_v63, 2102212464 }
 0x107   : > { %v844_v6 = vsel %vm834_vm4, %v830_v1, 1326507024  ;;  %v841_v7 = vsel %vm833_vm5, %v824_v63, %v840_v5  ;;  %v835_v49 = vsel %vm831_vm3, %v815_v40, %v818_v61  ;;  %v837_v50 = vsel %vm833_vm5, %v821_v62, %v836_v36 }
 0x108   : > { %v845_v8 = vsel %vm833_vm5, %v827_v0, %v844_v6  ;;  %v842_v9 = vsel %vm832_vm6, %v839_v3, %v841_v7  ;;  %v838_v42 = vsel %vm832_vm6, %v835_v49, %v837_v50  ;;  %v988_v0 = vld [vmem:[%s2044_s13 + $0x78] sm:$0xff]  ;;  %v985_v6 = vld [vmem:[%s2044_s13 + $0x60] sm:$0xff]  ;;  %v1103_v50 = vld [vmem:[%s2101_s23 + $0x70] sm:$0xff]  ;;  %vm942_vm3 = vweird.f32 %v2147_v33 }
 0x109   : > { %v846_v10 = vsel %vm832_vm6, %v843_v4, %v845_v8  ;;  %v872_v15 = vand.u32 65535, %v842_v9  ;;  %v873_v16 = vshrl.u32 %v842_v9, 16  ;;  %v892_v58 = vmul.u32 %v2164_v2, %v838_v42  ;;  %989 = vmatpush.msra.mxu2 %v988_v0  ;;  %v986_v4 = vld [vmem:[%s2044_s13 + $0x68] sm:$0xff]  ;;  %v984_v8 = vld [vmem:[%s2044_s13 + $0x58] sm:$0xff]  ;;  %v983_v9 = vld [vmem:[%s2044_s13 + $0x50] sm:$0xff] }
 0x10a   : > { %v850_v13 = vand.u32 65535, %v846_v10  ;;  %v851_v14 = vshrl.u32 %v846_v10, 16  ;;  %v982_v10 = vld [vmem:[%s2044_s13 + $0x48] sm:$0xff]  ;;  %v1101_v42 = vld [vmem:[%s2101_s23 + $0x60] sm:$0xff]  ;;  %vm1131_vm4 = vcmask 517120  }
 0x10b   : > { %v875_v19 = vmul.u32 %v873_v16, %v848_v11  ;;  %v876_v20 = vmul.u32 %v872_v15, %v849_v12  ;;  %v874_v24 = vmul.u32 %v872_v15, %v848_v11  ;;  %v877_v28 = vmul.u32 %v873_v16, %v849_v12  ;;  %990 = vmatpush.msra.mxu2 %v987_v44  ;;  %v981_v15 = vld [vmem:[%s2044_s13 + $0x40] sm:$0xff]  ;;  %v1099_v0 = vld [vmem:[%s2101_s23 + $0x50] sm:$0xff] }
 0x10c   : > { %v853_v17 = vmul.u32 %v851_v14, %v848_v11  ;;  %v854_v18 = vmul.u32 %v850_v13, %v849_v12  ;;  %v852_v21 = vmul.u32 %v850_v13, %v848_v11  ;;  %v855_v23 = vmul.u32 %v851_v14, %v849_v12 }
 0x10d   : > { %v878_v25 = vshll.u32 %v875_v19, 16  ;;  %v880_v31 = vshll.u32 %v876_v20, 16  ;;  %v879_v47 = vshrl.u32 %v875_v19, 16  ;;  %v881_v53 = vshrl.u32 %v876_v20, 16  ;;  %991 = vmatpush.msra.mxu2 %v986_v4  ;;  %v980_v19 = vld [vmem:[%s2044_s13 + $0x38] sm:$0xff]  ;;  %v1018_v4 = vld [vmem:[#allocation5 + $0x48] sm:$0xff] }
 0x10e   : > { %v856_v22 = vshll.u32 %v853_v17, 16  ;;  %v858_v26 = vshll.u32 %v854_v18, 16  ;;  %v857_v41 = vshrl.u32 %v853_v17, 16  ;;  %v859_v51 = vshrl.u32 %v854_v18, 16 }
 0x10f   : > { %vm882_vm8 = vc.u32 %v874_v24, %v878_v25  ;;  %v884_v32 = vadd.s32 %v878_v25, %v874_v24  ;;  %992 = vmatpush.msra.mxu2 %v985_v6  ;;  %v978_v24 = vld [vmem:[%s2044_s13 + $0x28] sm:$0xff] }
 0x110   : > { %vm860_vm7 = vc.u32 %v852_v21, %v856_v22  ;;  %v862_v27 = vadd.s32 %v856_v22, %v852_v21  ;;  %v883_v35 = vsel %vm882_vm8, 1, %v1867_v29  ;;  %v979_v22 = vld [vmem:[%s2044_s13 + $0x30] sm:$0xff] }
 0x111   : > { %v861_v30 = vsel %vm860_vm7, 1, %v1867_v29  ;;  %v885_v39 = vadd.s32 %v883_v35, %v877_v28  ;;  %vm886_vm10 = vc.u32 %v884_v32, %v880_v31  ;;  %v888_v56 = vadd.s32 %v884_v32, %v880_v31  ;;  %993 = vmatpush.msra.mxu2 %v984_v8  ;;  %v975_v31 = vld [vmem:[%s2044_s13 + $0x10] sm:$0xff]  ;;  %v974_v35 = vld [vmem:[%s2044_s13 + $0x8] sm:$0xff]  ;;  %v1097_v8 = vld [vmem:[%s2101_s23 + $0x40] sm:$0xff] }
 0x112   : > { %v863_v34 = vadd.s32 %v861_v30, %v855_v23  ;;  %vm864_vm9 = vc.u32 %v862_v27, %v858_v26  ;;  %v887_v46 = vsel %vm886_vm10, 1, %v1867_v29  ;;  %v977_v27 = vld [vmem:[%s2044_s13 + $0x20] sm:$0xff]  ;;  %v1750_v32 = vld [vmem:[%s2403_s14] ss:$0 sm:$0xff] }
 0x113   : > { %v865_v38 = vsel %vm864_vm9, 1, %v1867_v29  ;;  %v889_v48 = vadd.s32 %v887_v46, %v885_v39  ;;  %994 = vmatpush.msra.mxu2 %v983_v9  ;;  %v976_v29 = vld [vmem:[%s2044_s13 + $0x18] sm:$0xff]  ;;  %v973_v39 = vld [vmem:[%s2044_s13] sm:$0xff] }
 0x114   : > { %v867_v43 = vadd.s32 %v865_v38, %v863_v34  ;;  %v1104_v46 = vld [vmem:[%s2101_s23 + $0x78] sm:$0xff] }
 0x115   : > { %v890_v54 = vadd.s32 %v889_v48, %v879_v47  ;;  %995 = vmatpush.msra.mxu2 %v982_v10  ;;  %v1023_v47 = vld [vmem:[#allocation5 + $0x70] sm:$0xff]  ;;  %1109 = vmatpush.msrb.mxu1 %v1104_v46  ;;  %v954_v10 = vld [vmem:[%s2084_s30] sm:$0x1] }
 0x116   : > { %v868_v52 = vadd.s32 %v867_v43, %v857_v41  ;;  %v1024_v43 = vld [vmem:[#allocation5 + $0x78] sm:$0xff] }
 0x117   : > { %v891_v45 = vadd.s32 %v890_v54, %v881_v53  ;;  %996 = vmatpush.msra.mxu2 %v981_v15  ;;  %1025 = vmatpush.msra.mxu3 %v1024_v43 }
 0x118   : > { %v869_v55 = vadd.s32 %v868_v52, %v859_v51  ;;  %v1022_v51 = vld [vmem:[#allocation5 + $0x68] sm:$0xff]  ;;  %1047 = vmatpush.msrb.mxu0 %v1024_v43  ;;  %1110 = vmatpush.msrb.mxu1 %v1103_v50  ;;  %v1089_v43 = vld [vmem:[%s2101_s23] sm:$0xff] }
 0x119   : > { %v895_v57 = vadd.s32 1, %v891_v45  ;;  %997 = vmatpush.msra.mxu2 %v980_v19  ;;  %v1102_v52 = vld [vmem:[%s2101_s23 + $0x68] sm:$0xff]  ;;  %1026 = vmatpush.msra.mxu3 %v1023_v47 }
 0x11a   : > { %vm894_vm11 = vc.u32 %v869_v55, %v888_v56  ;;  %v893_v12 = vadd.s32 %v888_v56, %v869_v55  ;;  %v1021_v56 = vld [vmem:[#allocation5 + $0x60] sm:$0xff]  ;;  %1048 = vmatpush.msrb.mxu0 %v1023_v47  ;;  %1111 = vmatpush.msrb.mxu1 %v1102_v52  ;;  %v1751_v47 = vld [vmem:[%s710_s22] ss:$0 sm:$0xff] }
 0x11b   : > { %v896_v59 = vsel %vm894_vm11, %v895_v57, %v891_v45  ;;  %998 = vmatpush.msra.mxu2 %v979_v22  ;;  %1027 = vmatpush.msra.mxu3 %v1022_v51  ;;  %v1094_v22 = vld [vmem:[%s2101_s23 + $0x28] sm:$0xff] }
 0x11c   : > { %v897_v60 = vadd.s32 %v896_v59, %v892_v58  ;;  %v1020_v58 = vld [vmem:[#allocation5 + $0x58] sm:$0xff]  ;;  %1049 = vmatpush.msrb.mxu0 %v1022_v51  ;;  %1112 = vmatpush.msrb.mxu1 %v1101_v42 }
 0x11d   : > { %999 = vmatpush.msra.mxu2 %v978_v24  ;;  %v1100_v59 = vld [vmem:[%s2101_s23 + $0x58] sm:$0xff]  ;;  %1028 = vmatpush.msra.mxu3 %v1021_v56  ;;  %v1749_v24 = vld [vmem:[%s2084_s30] ss:$0 sm:$0xff] }
 0x11e   : > { %v898_v61 = vadd.s32 536870912, %v897_v60  ;;  %1050 = vmatpush.msrb.mxu0 %v1021_v56  ;;  %1113 = vmatpush.msrb.mxu1 %v1100_v59 }
 0x11f   : > { %1000 = vmatpush.msra.mxu2 %v977_v27  ;;  %1029 = vmatpush.msra.mxu3 %v1020_v58 }
 0x120   : > { %v2198_v62 = vshrl.u32 %v898_v61, 30  ;;  %1051 = vmatpush.msrb.mxu0 %v1020_v58  ;;  %1114 = vmatpush.msrb.mxu1 %v1099_v0  ;;  %v1753_v0 = vld [vmem:[%s702_s28] ss:$0 sm:$0xff]  ;;  %s2406_s28 = sld [smem:[#allocation23_spill]] (!%p1668_p1) }
 0x121   : > { %1001 = vmatpush.msra.mxu2 %v976_v29  ;;  %v1092_v29 = vld [vmem:[%s2101_s23 + $0x18] sm:$0xff] }
 0x122   : > { %v900_v63 = vshll.u32 %v2198_v62, 30  ;;  %v923_v37 = vsub.s32 4, %v2198_v62 }
 0x123   : > { %1002 = vmatpush.msra.mxu2 %v975_v31 }
 0x124   : > { %v901_v1 = vsub.s32 %v897_v60, %v900_v63  ;;  %v924_v55 = vsel %vm801_vm14, %v923_v37, %v2198_v62  ;;  %v1019_v62 = vld [vmem:[#allocation5 + $0x50] sm:$0xff]  ;;  %v1009_v37 = vld [vmem:[#allocation5] sm:$0xff] }
 0x125   : > { %1003 = vmatpush.msra.mxu2 %v974_v35  ;;  %v926_v60 = vsel %vm2218_vm15, 0, %v924_v55  ;;  %1030 = vmatpush.msra.mxu3 %v1019_v62  ;;  %v1091_v35 = vld [vmem:[%s2101_s23 + $0x10] sm:$0xff] }
 0x126   : > { %vm902_vm12 = vcmp.lt.s32.totalorder %v901_v1, 0  ;;  %v903_v3 = vsub.s32 0, %v901_v1  ;;  %1052 = vmatpush.msrb.mxu0 %v1019_v62 }
 0x127   : > { %1004 = vmatpush.msra.mxu2 %v973_v39  ;;  %1031 = vmatpush.msra.mxu3 %v1018_v4  ;;  %v1090_v39 = vld [vmem:[%s2101_s23 + $0x8] sm:$0xff] }
 0x128   : > { %v904_v2 = vsel %vm902_vm12, %v903_v3, %v901_v1  ;;  %v943_v3 = vand.u32 3, %v926_v60  ;;  %1053 = vmatpush.msrb.mxu0 %v1018_v4 }
 0x129   : > { %v905_v5 = vclz %v904_v2  ;;  %v1098_v2 = vld [vmem:[%s2101_s23 + $0x48] sm:$0xff] }
 0x12a   : > { %1115 = vmatpush.msrb.mxu1 %v1098_v2  ;;  %vm945_vm0 = vcmp.eq.s32.totalorder %v943_v3, 0  ;;  %vm948_vm1 = vcmp.eq.s32.totalorder %v943_v3, 2  ;;  %vm944_vm2 = vcmp.lt.s32.totalorder %v943_v3, 2 }
 0x12b   : > { %v1665_v7 = vadd.s32 4294967294, %v905_v5 }
 0x12c   : > { %1116 = vmatpush.msrb.mxu1 %v1097_v8 }
 0x12d   : > { %vm1666_vm13 = vcmp.lt.s32.totalorder %v1665_v7, 0 }
 0x12e   : > { %v908_v11 = vsel %vm1666_vm13, 0, %v1665_v7  ;;  %v1017_v7 = vld [vmem:[#allocation5 + $0x40] sm:$0xff] }
 0x12f   : > { %v909_v13 = vsub.s32 32, %v908_v11  ;;  %v913_v14 = vsub.s32 4294967266, %v908_v11  ;;  %v910_v16 = vshll.u32 %v901_v1, %v908_v11  ;;  %v1016_v11 = vld [vmem:[#allocation5 + $0x38] sm:$0xff]  ;;  %1032 = vmatpush.msra.mxu3 %v1017_v7  ;;  %1054 = vmatpush.msrb.mxu0 %v1017_v7 }
 0x131   : > { %v911_v17 = vshrl.u32 %v893_v12, %v909_v13  ;;  %v914_v18 = vadd.s32 127, %v913_v14  ;;  %v1096_v12 = vld [vmem:[%s2101_s23 + $0x38] sm:$0xff]  ;;  %1033 = vmatpush.msra.mxu3 %v1016_v11  ;;  %1055 = vmatpush.msrb.mxu0 %v1016_v11 }
 0x132   : > { %1117 = vmatpush.msrb.mxu1 %v1096_v12 }
 0x133   : > { %v912_v20 = vor.u32 %v911_v17, %v910_v16  ;;  %v915_v21 = vshll.u32 %v914_v18, 23  ;;  %v955_v16 = vsub.f32 -1.0, %v954_v10  ;;  %v1015_v17 = vld [vmem:[#allocation5 + $0x30] sm:$0xff] }
 0x134   : > { %v1095_v18 = vld [vmem:[%s2101_s23 + $0x30] sm:$0xff]  ;;  %1034 = vmatpush.msra.mxu3 %v1015_v17  ;;  %1056 = vmatpush.msrb.mxu0 %v1015_v17 }
 0x135   : > { %v916_v23 = vor.u32 4788187, %v915_v21  ;;  %v919_v26 = vcvt.s32.f32 %v912_v20  ;;  %v1014_v21 = vld [vmem:[#allocation5 + $0x28] sm:$0xff]  ;;  %1118 = vmatpush.msrb.mxu1 %v1095_v18 }
 0x136   : > { %1035 = vmatpush.msra.mxu3 %v1014_v21  ;;  %1057 = vmatpush.msrb.mxu0 %v1014_v21 }
 0x137   : > { %v917_v25 = vand.u32 2147483647, %v916_v23  ;;  %v957_v23 = vperm.slane %v955_v16, 0  ;;  %1119 = vmatpush.msrb.mxu1 %v1094_v22 }
 0x139   : > { %v920_v28 = vmul.f32 %v919_v26, %v917_v25  ;;  %v1013_v25 = vld [vmem:[#allocation5 + $0x20] sm:$0xff] }
 0x13a   : > { %v1093_v26 = vld [vmem:[%s2101_s23 + $0x20] sm:$0xff]  ;;  %1036 = vmatpush.msra.mxu3 %v1013_v25  ;;  %1058 = vmatpush.msrb.mxu0 %v1013_v25 }
 0x13b   : > { %v921_v30 = vxor.u32 2147483648, %v920_v28  ;;  %1120 = vmatpush.msrb.mxu1 %v1093_v26 }
 0x13d   : > { %v922_v34 = vsel %vm801_vm14, %v921_v30, %v920_v28  ;;  %v1012_v28 = vld [vmem:[#allocation5 + $0x18] sm:$0xff]  ;;  %1121 = vmatpush.msrb.mxu1 %v1092_v29 }
 0x13e   : > { %v925_v36 = vsel %vm2218_vm15, %v2147_v33, %v922_v34  ;;  %v1011_v34 = vld [vmem:[#allocation5 + $0x10] sm:$0xff]  ;;  %1037 = vmatpush.msra.mxu3 %v1012_v28  ;;  %1059 = vmatpush.msrb.mxu0 %v1012_v28 }
 0x13f   : > { %v927_v38 = vmul.f32 %v925_v36, %v925_v36  ;;  %1122 = vmatpush.msrb.mxu1 %v1091_v35 }
 0x140   : > { %1038 = vmatpush.msra.mxu3 %v1011_v34  ;;  %1060 = vmatpush.msrb.mxu0 %v1011_v34 }
 0x141   : > { %v935_v40 = vmul.f32 -0.00019511016, %v927_v38  ;;  %v928_v41 = vmul.f32 -0.001358992, %v927_v38  ;;  %1123 = vmatpush.msrb.mxu1 %v1090_v39 }
 0x143   : > { %v936_v48 = vadd.f32 0.008332121, %v935_v40  ;;  %v929_v49 = vadd.f32 0.041655596, %v928_v41  ;;  %1124 = vmatpush.msrb.mxu1 %v1089_v43 }
 0x145   : > { %v937_v53 = vmul.f32 %v936_v48, %v927_v38  ;;  %v930_v54 = vmul.f32 %v929_v49, %v927_v38  ;;  %v1129_v49 = vld [vmem:[#allocation2] sm:$0x3] }
 0x147   : > { %v938_v45 = vadd.f32 -0.16666654, %v937_v53  ;;  %v931_v57 = vadd.f32 -0.4999988, %v930_v54 }
 0x149   : > { %v939_v61 = vmul.f32 %v938_v45, %v927_v38  ;;  %v932_v63 = vmul.f32 %v931_v57, %v927_v38  ;;  %v1010_v38 = vld [vmem:[#allocation5 + $0x8] sm:$0xff] }
 0x14a   : > { %1039 = vmatpush.msra.mxu3 %v1010_v38  ;;  %1061 = vmatpush.msrb.mxu0 %v1010_v38 }
 0x14b   : > { %v940_v1 = vadd.f32 1.0, %v939_v61  ;;  %v933_v44 = vadd.f32 1.0, %v932_v63  ;;  %v1752_v61 = vld [vmem:[%s699_s2] ss:$0 sm:$0xff] }
 0x14c   : > { %1040 = vmatpush.msra.mxu3 %v1009_v37  ;;  %1062 = vmatpush.msrb.mxu0 %v1009_v37 }
 0x14d   : > { %v941_v5 = vmul.f32 %v940_v1, %v925_v36  ;;  %v949_v6 = vxor.u32 2147483648, %v933_v44 }
 0x14f   : > { %v946_v9 = vxor.u32 2147483648, %v941_v5  ;;  %v950_v14 = vsel %vm948_vm1, %v949_v6, %v941_v5 }
 0x151   : > { %v947_v13 = vsel %vm945_vm0, %v933_v44, %v946_v9 }
 0x152   : > { %v951_v15 = vsel %vm944_vm2, %v947_v13, %v950_v14 }
 0x153   : > { %v952_v19 = vsel %vm942_vm3, nan, %v951_v15 }
 0x154   : > { %v960_v20 = vmul.f32 2.0, %v952_v19  ;;  %v959_v30 = vadd.f32 %v957_v23, %v952_v19 }
 0x156   : > { %v961_v33 = vmul.f32 %v960_v20, %v952_v19 }
 0x158   : > { %v1667_v27 = vadd.f32 -1.0, %v961_v33 }
 0x15a   : > { %v966_v31 = vmul.f32 %v1749_v24, %v1667_v27 }
 0x15c   : > { %v967_v36 = vadd.f32 %v966_v31, %v959_v30 }
 0x15e   : > { %v971_v40 = vmul.f32 %v1750_v32, %v967_v36 }
 0x160   : > { %v972_v41 = vadd.f32 1.0, %v971_v40 }
 0x162   : > { %1005 = vmatmul.f32.vlgmr.msra.gmra.mxu2 %v972_v41 }
 0x1e5   : > { %v1006_v46 = vpop.f32.mrf.mxu2 }
 0x1e6   : > { %1041 = vmatmul.f32.vlgmr.msra.gmra.mxu3 %v1006_v46  ;;  %1125 = vmatmul.f32.vlgmr.msrb.gmra.mxu1 %v1006_v46 }
 0x263   : > { %v1126_v48 = vpop.f32.mrf.mxu1 }
 0x264   : > { %v1127_v50 = vadd.f32 %v1751_v47, %v1126_v48 }
 0x266   : > { %v1130_v51 = vadd.f32 %v1129_v49, %v1127_v50 }
 0x268   : > { %1132 = vst.msk [vmem:[#allocation2] sm:$0x3] %vm1131_vm4, %v1130_v51 }
 0x269   : > { %v1042_v52 = vpop.f32.mrf.mxu3 }
 0x26a   : > { %v1045_v53 = vsub.f32 %v1006_v46, %v1042_v52 }
 0x26c   : > { %v1046_v54 = vmul.f32 %v1045_v53, %v1045_v53 }
 0x26e   : > { %1063 = vmatmul.f32.vlgmr.msrb.gmra.mxu0 %v1046_v54 }
 0x2eb   : > { %v1064_v55 = vpop.f32.mrf.mxu0 }
 0x2ec   : > { %v1065_v56 = vadd.f32 1e-05, %v1064_v55 }
 0x2ee   : > { %1754 = vrsqrt.f32 %v1065_v56  ;;  %vm1073_vm6 = vweird.f32 %v1065_v56 }
 0x2f4   : > { %v1755_v42 = vpop.eup %1754 }
 0x2f5   : > { %v1068_v45 = vmul.f32 %v1755_v42, %v1065_v56  ;;  %vm1074_vm5 = vweird.f32 %v1755_v42 }
 0x2f6   : > { %vm1075_vm7 = vmor %vm1073_vm6, %vm1074_vm5 }
 0x2f7   : > { %v1069_v57 = vmul.f32 %v1755_v42, %v1068_v45 }
 0x2f9   : > { %v1070_v58 = vmul.f32 0.5, %v1069_v57 }
 0x2fb   : > { %v1071_v59 = vsub.f32 1.5, %v1070_v58 }
 0x2fd   : > { %v1072_v60 = vmul.f32 %v1755_v42, %v1071_v59 }
 0x2ff   : > { %v1076_v63 = vsel %vm1075_vm7, %v1755_v42, %v1072_v60 }
 0x300   : > { %v1077_v62 = vmul.f32 %v1076_v63, %v1045_v53 }
 0x302   : > { %v1082_v1 = vmul.f32 %v1752_v61, %v1077_v62  ;;  %1136 = sbr.rel (%p1668_p1) target bundleno = 876 (0x36c), region = 92 }
 0x304   : > { %v1087_v44 = vadd.f32 %v1753_v0, %v1082_v1 }
 0x306   : > { %1088 = vst [vmem:[%s2110_s26] sm:$0x3] %v1087_v44 }
 0x307   : > { %v2277_v3 = vld [vmem:[#allocation2] sm:$0x3]  ;;  %v1868_v14 = vmov 683565275   ;;  %v1869_v16 = vmov 2475754826  }
 0x308   : > { %v1142_v4 = vand.u32 2139095040, %v2277_v3  ;;  %v1139_v5 = vand.u32 2147483647, %v2277_v3  ;;  %v1870_v18 = vmov 2131351028   ;;  %vm1141_vm5 = vcmp.lt.s32.totalorder %v2277_v3, 0 }
 0x309   : > { %v1871_v20 = vmov 2102212464   ;;  %v1872_v22 = vmov 920167782   ;;  %v1873_v27 = vmov 1326507024  }
 0x30a   : > { %v1143_v2 = vshrl.u32 %v1142_v4, 23  ;;  %v1146_v8 = vand.u32 8388607, %v1139_v5  ;;  %v1874_v4 = vmov 0   ;;  %vm1140_vm6 = vcmp.le.f32.partialorder %v1139_v5, 0.7853982 }
 0x30c   : > { %v1669_v6 = vadd.s32 4294967169, %v1143_v2  ;;  %v1147_v11 = vor.u32 8388608, %v1146_v8 }
 0x30e   : > { %v1149_v7 = vadd.s32 1, %v1669_v6  ;;  %v2286_v29 = vshll.u32 %v1147_v11, 8 }
 0x310   : > { %vm1150_vm8 = vcmp.gt.s32.totalorder %v1149_v7, 0  ;;  %v1188_v43 = vand.u32 65535, %v2286_v29  ;;  %v1189_v46 = vshrl.u32 %v2286_v29, 16 }
 0x311   : > { %v1151_v9 = vsel %vm1150_vm8, %v1149_v7, 0 }
 0x312   : > { %v1153_v10 = vand.u32 31, %v1151_v9  ;;  %v2283_v12 = vshrl.u32 %v1151_v9, 5 }
 0x314   : > { %v1154_v13 = vsub.s32 32, %v1153_v10  ;;  %v1156_v15 = vshll.u32 %v1868_v14, %v1153_v10  ;;  %v1159_v17 = vshll.u32 %v1869_v16, %v1153_v10  ;;  %v1162_v19 = vshll.u32 %v1870_v18, %v1153_v10 }
 0x315   : > { %v1165_v21 = vshll.u32 %v1871_v20, %v1153_v10  ;;  %v1168_v23 = vshll.u32 %v1872_v22, %v1153_v10  ;;  %vm1171_vm9 = vcmp.lt.s32.totalorder %v2283_v12, 1  ;;  %vm1174_vm10 = vcmp.lt.s32.totalorder %v2283_v12, 4 }
 0x316   : > { %v1157_v33 = vshrl.u32 %v1869_v16, %v1154_v13  ;;  %v1160_v24 = vshrl.u32 %v1870_v18, %v1154_v13  ;;  %v1163_v25 = vshrl.u32 %v1871_v20, %v1154_v13  ;;  %v1166_v26 = vshrl.u32 %v1872_v22, %v1154_v13 }
 0x317   : > { %v1169_v28 = vshrl.u32 %v1873_v27, %v1154_v13  ;;  %vm1173_vm11 = vcmp.lt.s32.totalorder %v2283_v12, 3  ;;  %vm1172_vm12 = vcmp.lt.s32.totalorder %v2283_v12, 2  ;;  %v1155_v53 = vshrl.u32 %v1868_v14, %v1154_v13 }
 0x318   : > { %v1158_v30 = vor.u32 %v1157_v33, %v1156_v15  ;;  %v1161_v31 = vor.u32 %v1160_v24, %v1159_v17  ;;  %v1164_v32 = vor.u32 %v1163_v25, %v1162_v19  ;;  %v1167_v34 = vor.u32 %v1166_v26, %v1165_v21 }
 0x319   : > { %v1170_v35 = vor.u32 %v1169_v28, %v1168_v23 }
 0x31a   : > { %v1179_v36 = vsel %vm1171_vm9, %v1158_v30, %v1161_v31  ;;  %v1183_v38 = vsel %vm1171_vm9, %v1161_v31, %v1164_v32  ;;  %v1180_v39 = vsel %vm1174_vm10, %v1167_v34, 920167782  ;;  %v1175_v0 = vsel %vm1171_vm9, %v1155_v53, %v1158_v30 }
 0x31b   : > { %v1184_v40 = vsel %vm1174_vm10, %v1170_v35, 1326507024  ;;  %v1181_v41 = vsel %vm1173_vm11, %v1164_v32, %v1180_v39  ;;  %v1176_v44 = vsel %vm1174_vm10, %v1164_v32, 2102212464 }
 0x31c   : > { %v1185_v37 = vsel %vm1173_vm11, %v1167_v34, %v1184_v40  ;;  %v1182_v47 = vsel %vm1172_vm12, %v1179_v36, %v1181_v41  ;;  %v1177_v14 = vsel %vm1173_vm11, %v1161_v31, %v1176_v44 }
 0x31d   : > { %v1186_v48 = vsel %vm1172_vm12, %v1183_v38, %v1185_v37  ;;  %v1212_v51 = vand.u32 65535, %v1182_v47  ;;  %v1213_v52 = vshrl.u32 %v1182_v47, 16  ;;  %v1178_v22 = vsel %vm1172_vm12, %v1175_v0, %v1177_v14 }
 0x31e   : > { %v1190_v49 = vand.u32 65535, %v1186_v48  ;;  %v1191_v50 = vshrl.u32 %v1186_v48, 16  ;;  %v1232_v25 = vmul.u32 %v2286_v29, %v1178_v22 }
 0x31f   : > { %v1214_v42 = vmul.u32 %v1212_v51, %v1188_v43  ;;  %v1215_v45 = vmul.u32 %v1213_v52, %v1188_v43  ;;  %v1216_v57 = vmul.u32 %v1212_v51, %v1189_v46  ;;  %v1217_v61 = vmul.u32 %v1213_v52, %v1189_v46 }
 0x320   : > { %v1192_v54 = vmul.u32 %v1190_v49, %v1188_v43  ;;  %v1193_v55 = vmul.u32 %v1191_v50, %v1188_v43  ;;  %v1194_v56 = vmul.u32 %v1190_v49, %v1189_v46  ;;  %v1195_v58 = vmul.u32 %v1191_v50, %v1189_v46 }
 0x321   : > { %v1218_v63 = vshll.u32 %v1215_v45, 16  ;;  %v1220_v62 = vshll.u32 %v1216_v57, 16  ;;  %v1219_v11 = vshrl.u32 %v1215_v45, 16  ;;  %v1221_v18 = vshrl.u32 %v1216_v57, 16 }
 0x322   : > { %v1196_v59 = vshll.u32 %v1193_v55, 16  ;;  %v1198_v60 = vshll.u32 %v1194_v56, 16  ;;  %v1197_v7 = vshrl.u32 %v1193_v55, 16  ;;  %v1199_v15 = vshrl.u32 %v1194_v56, 16 }
 0x323   : > { %vm1222_vm14 = vc.u32 %v1214_v42, %v1218_v63  ;;  %v1224_v6 = vadd.s32 %v1218_v63, %v1214_v42 }
 0x324   : > { %vm1200_vm13 = vc.u32 %v1192_v54, %v1196_v59  ;;  %v1202_v1 = vadd.s32 %v1196_v59, %v1192_v54  ;;  %v1223_v9 = vsel %vm1222_vm14, 1, %v1874_v4 }
 0x325   : > { %v1201_v2 = vsel %vm1200_vm13, 1, %v1874_v4  ;;  %v1225_v13 = vadd.s32 %v1223_v9, %v1217_v61  ;;  %vm1226_vm0 = vc.u32 %v1224_v6, %v1220_v62  ;;  %v1228_v21 = vadd.s32 %v1224_v6, %v1220_v62 }
 0x326   : > { %v1203_v8 = vadd.s32 %v1201_v2, %v1195_v58  ;;  %vm1204_vm15 = vc.u32 %v1202_v1, %v1198_v60  ;;  %v1227_v17 = vsel %vm1226_vm0, 1, %v1874_v4  ;;  %vm1282_vm13 = vweird.f32 %v2277_v3 }
 0x327   : > { %v1205_v10 = vsel %vm1204_vm15, 1, %v1874_v4  ;;  %v1229_v19 = vadd.s32 %v1227_v17, %v1225_v13 }
 0x328   : > { %v1207_v16 = vadd.s32 %v1205_v10, %v1203_v8 }
 0x329   : > { %v1230_v23 = vadd.s32 %v1229_v19, %v1219_v11 }
 0x32a   : > { %v1208_v20 = vadd.s32 %v1207_v16, %v1197_v7 }
 0x32b   : > { %v1231_v24 = vadd.s32 %v1230_v23, %v1221_v18 }
 0x32c   : > { %v1209_v33 = vadd.s32 %v1208_v20, %v1199_v15  ;;  %v1756_v15 = vld [vmem:[%s2406_s28] ss:$0 sm:$0xff] }
 0x32d   : > { %v1235_v26 = vadd.s32 1, %v1231_v24 }
 0x32e   : > { %vm1234_vm1 = vc.u32 %v1209_v33, %v1228_v21  ;;  %v1233_v12 = vadd.s32 %v1228_v21, %v1209_v33 }
 0x32f   : > { %v1236_v27 = vsel %vm1234_vm1, %v1235_v26, %v1231_v24 }
 0x330   : > { %v1237_v28 = vadd.s32 %v1236_v27, %v1232_v25 }
 0x332   : > { %v1238_v30 = vadd.s32 536870912, %v1237_v28 }
 0x334   : > { %v1239_v31 = vshrl.u32 %v1238_v30, 30 }
 0x336   : > { %v1240_v32 = vshll.u32 %v1239_v31, 30  ;;  %v1263_v53 = vsub.s32 4, %v1239_v31 }
 0x338   : > { %v1241_v34 = vsub.s32 %v1237_v28, %v1240_v32  ;;  %v1264_v56 = vsel %vm1141_vm5, %v1263_v53, %v1239_v31 }
 0x339   : > { %v1266_v57 = vsel %vm1140_vm6, 0, %v1264_v56 }
 0x33a   : > { %vm1242_vm2 = vcmp.lt.s32.totalorder %v1241_v34, 0  ;;  %v1243_v35 = vsub.s32 0, %v1241_v34  ;;  %v1442_v63 = vadd.s32 3, %v1266_v57  ;;  %v1283_v4 = vand.u32 3, %v1266_v57 }
 0x33c   : > { %v1244_v36 = vsel %vm1242_vm2, %v1243_v35, %v1241_v34  ;;  %v1443_v2 = vand.u32 3, %v1442_v63  ;;  %vm1288_vm7 = vcmp.eq.s32.totalorder %v1283_v4, 2  ;;  %vm1284_vm9 = vcmp.lt.s32.totalorder %v1283_v4, 2 }
 0x33d   : > { %v1245_v38 = vclz %v1244_v36  ;;  %vm1285_vm10 = vcmp.eq.s32.totalorder %v1283_v4, 0 }
 0x33e   : > { %vm1448_vm8 = vcmp.eq.s32.totalorder %v1443_v2, 2  ;;  %vm1445_vm11 = vcmp.eq.s32.totalorder %v1443_v2, 0  ;;  %vm1444_vm12 = vcmp.lt.s32.totalorder %v1443_v2, 2 }
 0x33f   : > { %v1670_v39 = vadd.s32 4294967294, %v1245_v38 }
 0x341   : > { %vm1671_vm3 = vcmp.lt.s32.totalorder %v1670_v39, 0 }
 0x342   : > { %v1248_v40 = vsel %vm1671_vm3, 0, %v1670_v39 }
 0x343   : > { %v1249_v41 = vsub.s32 32, %v1248_v40  ;;  %v1250_v37 = vshll.u32 %v1241_v34, %v1248_v40  ;;  %v1253_v43 = vsub.s32 4294967266, %v1248_v40 }
 0x345   : > { %v1251_v29 = vshrl.u32 %v1233_v12, %v1249_v41  ;;  %v1254_v46 = vadd.s32 127, %v1253_v43 }
 0x347   : > { %v1252_v47 = vor.u32 %v1251_v29, %v1250_v37  ;;  %v1255_v48 = vshll.u32 %v1254_v46, 23 }
 0x349   : > { %v1256_v49 = vor.u32 4788187, %v1255_v48  ;;  %v1259_v50 = vcvt.s32.f32 %v1252_v47 }
 0x34b   : > { %v1257_v51 = vand.u32 2147483647, %v1256_v49 }
 0x34d   : > { %v1260_v52 = vmul.f32 %v1259_v50, %v1257_v51 }
 0x34f   : > { %v1261_v54 = vxor.u32 2147483648, %v1260_v52 }
 0x351   : > { %v1262_v55 = vsel %vm1141_vm5, %v1261_v54, %v1260_v52 }
 0x352   : > { %v1265_v42 = vsel %vm1140_vm6, %v2277_v3, %v1262_v55 }
 0x353   : > { %v1267_v45 = vmul.f32 %v1265_v42, %v1265_v42 }
 0x355   : > { %v1268_v58 = vmul.f32 -0.001358992, %v1267_v45  ;;  %v1275_v59 = vmul.f32 -0.00019511016, %v1267_v45 }
 0x357   : > { %v1269_v60 = vadd.f32 0.041655596, %v1268_v58  ;;  %v1276_v61 = vadd.f32 0.008332121, %v1275_v59 }
 0x359   : > { %v1270_v62 = vmul.f32 %v1269_v60, %v1267_v45  ;;  %v1277_v0 = vmul.f32 %v1276_v61, %v1267_v45 }
 0x35b   : > { %v1271_v1 = vadd.f32 -0.4999988, %v1270_v62  ;;  %v1278_v44 = vadd.f32 -0.16666654, %v1277_v0 }
 0x35d   : > { %v1272_v6 = vmul.f32 %v1271_v1, %v1267_v45  ;;  %v1279_v5 = vmul.f32 %v1278_v44, %v1267_v45 }
 0x35f   : > { %v1273_v7 = vadd.f32 1.0, %v1272_v6  ;;  %v1280_v8 = vadd.f32 1.0, %v1279_v5 }
 0x361   : > { %v1281_v9 = vmul.f32 %v1280_v8, %v1265_v42  ;;  %v1289_v10 = vxor.u32 2147483648, %v1273_v7 }
 0x363   : > { %v1286_v11 = vxor.u32 2147483648, %v1281_v9  ;;  %v1290_v13 = vsel %vm1288_vm7, %v1289_v10, %v1281_v9  ;;  %v1450_v14 = vsel %vm1448_vm8, %v1289_v10, %v1281_v9 }
 0x365   : > { %v1287_v16 = vsel %vm1285_vm10, %v1273_v7, %v1286_v11  ;;  %v1447_v17 = vsel %vm1445_vm11, %v1273_v7, %v1286_v11 }
 0x366   : > { %v1291_v18 = vsel %vm1284_vm9, %v1287_v16, %v1290_v13  ;;  %v1451_v19 = vsel %vm1444_vm12, %v1447_v17, %v1450_v14 }
 0x367   : > { %v1292_v20 = vsel %vm1282_vm13, nan, %v1291_v18  ;;  %v1452_v21 = vsel %vm1282_vm13, nan, %v1451_v19 }
 0x368   : > { %v1296_v22 = vmul.f32 %v1756_v15, %v1292_v20  ;;  %v1453_v23 = vmul.f32 %v1756_v15, %v1452_v21 }
 0x36a   : > { %1297 = vst.msk [vmem:[%s2407_s15] sm:$0x3] %vm1131_vm4, %v1296_v22 }
 0x36b   : > { %1454 = vst.msk [vmem:[%s2408_s0] sm:$0x3] %vm1131_vm4, %v1453_v23 }
 0x36c PF: > { %s2409_s24 = sld [smem:[#allocation11_spill]] }
 0x36d   : > { %s2410_s21 = sld [smem:[#allocation9_spill]] }
 0x36e   : > { %s2411_s22 = sld [smem:[#allocation10_spill]] }
 0x36f   : > { %s2412_s23 = sld [smem:[#allocation12_spill]] }
 0x372   : > { %p28_p4 = scmp.ge.s32.totalorder %s2409_s24, 5  }
 0x374   :  { %30 = sbr.rel (!%p28_p4) target bundleno = 19 (0x13), region = 174 }
 0x379   :  { %1486 = vsyncpa [#allocation4], 1 }
 0x37a   :  { %1488 = vsyncpa [#allocation4 + $0x1], 1 }
 0x37b   :  { %1489 = vsyncpa [#allocation6], 1 }

</bundles_post_ra>
